<compile_context>
chip_gen: v7x
topology: tpu7x:2x2x1
jax: 0.10.0
libtpu: 0.0.40
codegen_flags: <defaults>
</compile_context>

<pallas_src>
import functools

import jax
import jax.numpy as jnp
import numpy as np
from jax.experimental import pallas as pl
from jax.experimental.pallas import tpu as pltpu

EPS = 1e-5


def _round_up(x, m):
    return (x + m - 1) // m * m


# ----------------------------- Pallas kernel ------------------------------ #

def _segnet_kernel(x_ref, mask_ref, *refs, offsets, relu_flags, total_lanes, mask_rows):
    # x_ref:    (C0_pad, total_lanes)  zero-halo-padded input, all batch elements
    # mask_ref: (1, total_lanes)       1.0 at interior (valid) positions, 0.0 at halo/tail
    # refs:     (w1, b1, w2, b2, w3, b3, w4, b4, out)
    #   w_l: (9, Cout_pad_l, Cin_pad_l) per-tap dense block-diagonal weight (BN folded in)
    #   b_l: (Cout_pad_l, 1)            effective bias (BN folded in)
    # out:      (Cout_pad_last, total_lanes)
    o_ref = refs[-1]
    wb_refs = refs[:-1]
    n_layers = len(relu_flags)

    # Hoist the interior-mask broadcast out of the layer loop (JAX does not CSE it).
    mask_b = jnp.broadcast_to(mask_ref[...], (mask_rows, total_lanes))

    a = x_ref[...]                                            # (Cin_pad, total_lanes)
    for l, relu in enumerate(relu_flags):
        w_ref = wb_refs[2 * l]                                # (9, Cout_pad, Cin_pad)
        b = wb_refs[2 * l + 1][...]                           # (Cout_pad, 1)
        cout_pad = w_ref.shape[1]

        # Per-tap matmul accumulation (no im2col concat / big VMEM temporary).
        # Tap with flat offset `off` needs a[c, p + off]; with jnp.roll convention
        # that is a roll by (-off) mod total_lanes. Interior positions never read
        # across the halo thanks to the 1-pixel zero halo (halo/tail results are
        # discarded by the mask / final slice).
        acc = None
        for t, off in enumerate(offsets):
            s = (-off) % total_lanes
            a_t = pltpu.roll(a, s, axis=1) if s else a
            contrib = jnp.dot(w_ref[t], a_t, preferred_element_type=jnp.float32)
            acc = contrib if acc is None else acc + contrib

        y = acc + b
        if relu:
            y = jnp.maximum(y, 0.0)
        if l < n_layers - 1:
            a = y * mask_b[:cout_pad]                         # re-zero halo / lane padding
        else:
            a = y                                             # final layer: wrapper slices interior
    o_ref[...] = a.astype(o_ref.dtype)


# --------------------------- parameter plumbing ---------------------------- #

def densify_grouped_weight(w, cin, groups, cin_pad, cout_pad):
    """PyTorch grouped weight (Cout, Cin/G, 3, 3) -> dense block-diagonal per-tap
    weight of shape (9, Cout_pad, Cin_pad); tap index t = ky*3 + kx matches the
    kernel's `offsets` ordering."""
    cout = w.shape[0]
    cin_g, cout_g = cin // groups, cout // groups
    dense = jnp.zeros((9, cout_pad, cin_pad), jnp.float32)
    for g in range(groups):
        wg = w[g * cout_g:(g + 1) * cout_g]                              # (cout_g, cin_g, 3, 3)
        wg = jnp.transpose(wg, (2, 3, 0, 1)).reshape(9, cout_g, cin_g)   # (9, cout_g, cin_g)
        dense = dense.at[:, g * cout_g:(g + 1) * cout_g,
                         g * cin_g:(g + 1) * cin_g].set(wg)
    return dense


def make_layer_params(key, cin, cout, groups, has_bn):
    ks = jax.random.split(key, 6)
    fan_in = (cin // groups) * 9
    bound = 1.0 / np.sqrt(fan_in)
    w = jax.random.uniform(ks[0], (cout, cin // groups, 3, 3), jnp.float32, -bound, bound)
    b = jax.random.uniform(ks[1], (cout,), jnp.float32, -bound, bound)
    if has_bn:
        gamma = 1.0 + 0.1 * jax.random.normal(ks[2], (cout,), jnp.float32)
        beta = 0.1 * jax.random.normal(ks[3], (cout,), jnp.float32)
        mean = 0.1 * jax.random.normal(ks[4], (cout,), jnp.float32)
        var = jnp.abs(jax.random.normal(ks[5], (cout,), jnp.float32)) + 0.5
        bn = (gamma, beta, mean, var)
    else:
        bn = None
    return w, b, bn


def fold_bn(w, b, bn):
    """Fold eval-mode BatchNorm into conv weight/bias (per output channel)."""
    if bn is None:
        return w, b
    gamma, beta, mean, var = bn
    scale = gamma / jnp.sqrt(var + EPS)
    w_eff = w * scale[:, None, None, None]
    b_eff = (b - mean) * scale + beta
    return w_eff, b_eff


# ------------------------- full network (Pallas) --------------------------- #

def group_conv_seg_net_pallas(x_nchw, layers):
    N, C0, H, W = x_nchw.shape
    Hp, Wp = H + 2, W + 2
    s_valid = Hp * Wp
    s_blk = _round_up(s_valid, 128)          # lane-dense block per batch element
    c0_pad = _round_up(C0, 8)

    # Collapse the batch into a single grid step (the kernel at this size is
    # step-overhead dominated; one fat 768-lane tile beats two 384-lane ones).
    B_TILE = N
    total_lanes = B_TILE * s_blk
    grid = (pl.cdiv(N, B_TILE),)             # == (1,)

    # flat lane offsets of the 9 taps (ky, kx) relative to the output position
    offsets = tuple((ky - 1) * Wp + (kx - 1) for ky in range(3) for kx in range(3))

    # Zero-halo pad once; channels -> sublanes, (batch, padded spatial) -> lanes.
    # TODO(synk): this pad/transpose plumbing is a separate XLA op; could be fused
    # into the kernel (zeroed VMEM scratch + sliced copy) if wrapper cost matters.
    xp = jnp.pad(x_nchw, ((0, 0), (0, 0), (1, 1), (1, 1)))            # (N, C0, Hp, Wp)
    xc = jnp.transpose(xp, (1, 0, 2, 3)).reshape(C0, N, s_valid)
    xc = jnp.pad(xc, ((0, c0_pad - C0), (0, 0), (0, s_blk - s_valid)))
    xc = xc.reshape(c0_pad, N * s_blk)                                # (C0_pad, N*s_blk)

    # Interior mask, tiled across the B_TILE batch elements of one grid step.
    m = np.zeros((Hp, Wp), np.float32)
    m[1:H + 1, 1:W + 1] = 1.0
    mask1 = np.zeros((1, s_blk), np.float32)
    mask1[0, :s_valid] = m.reshape(-1)
    mask = jnp.asarray(np.tile(mask1, (1, B_TILE)))                   # (1, total_lanes)

    kern_inputs = [xc, mask]
    in_specs = [
        pl.BlockSpec((c0_pad, total_lanes), lambda n: (0, n)),
        pl.BlockSpec((1, total_lanes), lambda n: (0, 0)),
    ]
    relu_flags = []
    cout_pads = []
    cin, cin_pad = C0, c0_pad
    for (w, b, bn, relu_flag, groups) in layers:
        cout = w.shape[0]
        cout_pad = _round_up(cout, 8)
        w_eff, b_eff = fold_bn(w, b, bn)
        w_dense = densify_grouped_weight(w_eff, cin, groups, cin_pad, cout_pad)
        b_pad = jnp.zeros((cout_pad, 1), jnp.float32).at[:cout, 0].set(b_eff)
        kern_inputs += [w_dense, b_pad]
        in_specs += [
            pl.BlockSpec((9, cout_pad, cin_pad), lambda n: (0, 0, 0)),
            pl.BlockSpec((cout_pad, 1), lambda n: (0, 0)),
        ]
        relu_flags.append(bool(relu_flag))
        cout_pads.append(cout_pad)
        cin, cin_pad = cout, cout_pad

    cout_last, out_pad = cin, cin_pad
    mask_rows = max(cout_pads[:-1]) if len(cout_pads) > 1 else cout_pads[0]

    kern = functools.partial(_segnet_kernel, offsets=offsets,
                             relu_flags=tuple(relu_flags),
                             total_lanes=total_lanes, mask_rows=mask_rows)

    out = pl.pallas_call(
        kern,
        out_shape=jax.ShapeDtypeStruct((out_pad, N * s_blk), jnp.float32),
        grid_spec=pltpu.PrefetchScalarGridSpec(
            num_scalar_prefetch=0,
            grid=grid,
            in_specs=in_specs,
            out_specs=pl.BlockSpec((out_pad, total_lanes), lambda n: (0, n)),
        ),
        compiler_params=pltpu.CompilerParams(dimension_semantics=("arbitrary",)),
    )(*kern_inputs)

    # (Cout_pad, N*s_blk) -> (N, Cout, H, W): drop channel/lane padding and halo.
    y = out.reshape(out_pad, N, s_blk)[:cout_last, :, :s_valid]
    y = y.reshape(cout_last, N, Hp, Wp)[:, :, 1:H + 1, 1:W + 1]
    return jnp.transpose(y, (1, 0, 2, 3))


# ------------------------------ JAX reference ------------------------------ #

def group_conv_seg_net_ref(x, layers):
    y = x
    for (w, b, bn, relu_flag, groups) in layers:
        y = jax.lax.conv_general_dilated(
            y, w, (1, 1), ((1, 1), (1, 1)),
            dimension_numbers=('NCHW', 'OIHW', 'NCHW'),
            feature_group_count=groups) + b[None, :, None, None]
        if bn is not None:
            gamma, beta, mean, var = bn
            y = (y - mean[None, :, None, None]) / jnp.sqrt(var[None, :, None, None] + EPS)
            y = y * gamma[None, :, None, None] + beta[None, :, None, None]
        if relu_flag:
            y = jnp.maximum(y, 0.0)
    return y


# ---------------------------------- main ----------------------------------- #

if __name__ == "__main__":
    in_channel, out_channel = 8, 2
    N, H, W = 2, 16, 16

    key = jax.random.PRNGKey(0)
    kx, k1, k2, k3, k4 = jax.random.split(key, 5)
    x = jax.random.normal(kx, (N, in_channel, H, W), jnp.float32)

    G = out_channel
    # (weight, bias, bn_params, relu?, groups) matching the nn.Sequential order.
    layers = []
    w, b, bn = make_layer_params(k1, in_channel, in_channel, G, True)
    layers.append((w, b, bn, True, G))                       # conv+BN+ReLU(+Dropout2d)
    w, b, bn = make_layer_params(k2, in_channel, in_channel // 2, G, True)
    layers.append((w, b, bn, True, G))                       # conv+BN+ReLU
    w, b, bn = make_layer_params(k3, in_channel // 2, in_channel // 2, G, True)
    layers.append((w, b, bn, True, G))                       # conv+BN+ReLU
    w, b, bn = make_layer_params(k4, in_channel // 2, out_channel, G, False)
    layers.append((w, b, bn, False, G))                      # final conv only

    out = group_conv_seg_net_pallas(x, layers)
    out = jax.block_until_ready(out)

    ref = group_conv_seg_net_ref(x, layers)
    ref = jax.block_until_ready(ref)

    assert out.shape == (N, out_channel, H, W), out.shape
    np.testing.assert_allclose(np.asarray(out), np.asarray(ref), rtol=1e-4, atol=1e-4)
    print("KERNEL_OK")
</pallas_src>

<mosaic_0001>
module attributes {stable_mosaic.version = 11 : i64} {
  func.func @_segnet_kernel(%arg0: i32, %arg1: memref<8x768xf32, #tpu.memory_space<vmem>>, %arg2: memref<1x768xf32, #tpu.memory_space<vmem>>, %arg3: memref<9x8x8xf32, #tpu.memory_space<vmem>>, %arg4: memref<8x1xf32, #tpu.memory_space<vmem>>, %arg5: memref<9x8x8xf32, #tpu.memory_space<vmem>>, %arg6: memref<8x1xf32, #tpu.memory_space<vmem>>, %arg7: memref<9x8x8xf32, #tpu.memory_space<vmem>>, %arg8: memref<8x1xf32, #tpu.memory_space<vmem>>, %arg9: memref<9x8x8xf32, #tpu.memory_space<vmem>>, %arg10: memref<8x1xf32, #tpu.memory_space<vmem>>, %arg11: memref<8x768xf32, #tpu.memory_space<vmem>>) attributes {dimension_semantics = [#tpu.dimension_semantics<arbitrary>], iteration_bounds = array<i64: 1>, scalar_prefetch = 0 : i64, scratch_operands = 0 : i64, tpu.core_type = #tpu.core_type<tc>, window_params = [{transform_indices = @transform_0, window_bounds = array<i64: 8, 768>}, {pipeline_mode = #tpu.pipeline_mode<synchronous>, transform_indices = @transform_1, window_bounds = array<i64: 1, 768>}, {pipeline_mode = #tpu.pipeline_mode<synchronous>, transform_indices = @transform_2, window_bounds = array<i64: 9, 8, 8>}, {pipeline_mode = #tpu.pipeline_mode<synchronous>, transform_indices = @transform_3, window_bounds = array<i64: 8, 1>}, {pipeline_mode = #tpu.pipeline_mode<synchronous>, transform_indices = @transform_4, window_bounds = array<i64: 9, 8, 8>}, {pipeline_mode = #tpu.pipeline_mode<synchronous>, transform_indices = @transform_5, window_bounds = array<i64: 8, 1>}, {pipeline_mode = #tpu.pipeline_mode<synchronous>, transform_indices = @transform_6, window_bounds = array<i64: 9, 8, 8>}, {pipeline_mode = #tpu.pipeline_mode<synchronous>, transform_indices = @transform_7, window_bounds = array<i64: 8, 1>}, {pipeline_mode = #tpu.pipeline_mode<synchronous>, transform_indices = @transform_8, window_bounds = array<i64: 9, 8, 8>}, {pipeline_mode = #tpu.pipeline_mode<synchronous>, transform_indices = @transform_9, window_bounds = array<i64: 8, 1>}, {transform_indices = @transform_10, window_bounds = array<i64: 8, 768>}]} {
    %c0 = arith.constant 0 : index
    %c0_0 = arith.constant 0 : index
    %0 = vector.load %arg2[%c0, %c0_0] : memref<1x768xf32, #tpu.memory_space<vmem>>, vector<1x768xf32>
    %1 = vector.shape_cast %0 : vector<1x768xf32> to vector<1x768xf32>
    %2 = vector.broadcast %1 : vector<1x768xf32> to vector<8x768xf32>
    %c0_1 = arith.constant 0 : index
    %c0_2 = arith.constant 0 : index
    %3 = vector.load %arg1[%c0_1, %c0_2] : memref<8x768xf32, #tpu.memory_space<vmem>>, vector<8x768xf32>
    %c0_3 = arith.constant 0 : index
    %c0_4 = arith.constant 0 : index
    %4 = vector.load %arg4[%c0_3, %c0_4] : memref<8x1xf32, #tpu.memory_space<vmem>>, vector<8x1xf32>
    %c19_i32 = arith.constant 19 : i32
    %5 = tpu.dynamic_rotate %3 by %c19_i32 dim 1 : vector<8x768xf32>, i32 -> vector<8x768xf32>
    %c0_5 = arith.constant 0 : index
    %c0_6 = arith.constant 0 : index
    %c0_7 = arith.constant 0 : index
    %6 = vector.load %arg3[%c0_5, %c0_6, %c0_7] : memref<9x8x8xf32, #tpu.memory_space<vmem>>, vector<1x8x8xf32>
    %7 = vector.shape_cast %6 : vector<1x8x8xf32> to vector<8x8xf32>
    %cst = arith.constant dense<0.000000e+00> : vector<8x768xf32>
    %8 = tpu.matmul %7, %5, %cst {dimension_numbers = #tpu.dot_dimension_numbers<[1], [0], [0], [1], [0, 0, 1, 1], [], []>} : vector<8x8xf32>, vector<8x768xf32>, vector<8x768xf32> -> vector<8x768xf32>
    %c18_i32 = arith.constant 18 : i32
    %9 = tpu.dynamic_rotate %3 by %c18_i32 dim 1 : vector<8x768xf32>, i32 -> vector<8x768xf32>
    %c1 = arith.constant 1 : index
    %c0_8 = arith.constant 0 : index
    %c0_9 = arith.constant 0 : index
    %10 = vector.load %arg3[%c1, %c0_8, %c0_9] : memref<9x8x8xf32, #tpu.memory_space<vmem>>, vector<1x8x8xf32>
    %11 = vector.shape_cast %10 : vector<1x8x8xf32> to vector<8x8xf32>
    %cst_10 = arith.constant dense<0.000000e+00> : vector<8x768xf32>
    %12 = tpu.matmul %11, %9, %cst_10 {dimension_numbers = #tpu.dot_dimension_numbers<[1], [0], [0], [1], [0, 0, 1, 1], [], []>} : vector<8x8xf32>, vector<8x768xf32>, vector<8x768xf32> -> vector<8x768xf32>
    %13 = arith.addf %8, %12 : vector<8x768xf32>
    %c17_i32 = arith.constant 17 : i32
    %14 = tpu.dynamic_rotate %3 by %c17_i32 dim 1 : vector<8x768xf32>, i32 -> vector<8x768xf32>
    %c2 = arith.constant 2 : index
    %c0_11 = arith.constant 0 : index
    %c0_12 = arith.constant 0 : index
    %15 = vector.load %arg3[%c2, %c0_11, %c0_12] : memref<9x8x8xf32, #tpu.memory_space<vmem>>, vector<1x8x8xf32>
    %16 = vector.shape_cast %15 : vector<1x8x8xf32> to vector<8x8xf32>
    %cst_13 = arith.constant dense<0.000000e+00> : vector<8x768xf32>
    %17 = tpu.matmul %16, %14, %cst_13 {dimension_numbers = #tpu.dot_dimension_numbers<[1], [0], [0], [1], [0, 0, 1, 1], [], []>} : vector<8x8xf32>, vector<8x768xf32>, vector<8x768xf32> -> vector<8x768xf32>
    %18 = arith.addf %13, %17 : vector<8x768xf32>
    %c1_i32 = arith.constant 1 : i32
    %19 = tpu.dynamic_rotate %3 by %c1_i32 dim 1 : vector<8x768xf32>, i32 -> vector<8x768xf32>
    %c3 = arith.constant 3 : index
    %c0_14 = arith.constant 0 : index
    %c0_15 = arith.constant 0 : index
    %20 = vector.load %arg3[%c3, %c0_14, %c0_15] : memref<9x8x8xf32, #tpu.memory_space<vmem>>, vector<1x8x8xf32>
    %21 = vector.shape_cast %20 : vector<1x8x8xf32> to vector<8x8xf32>
    %cst_16 = arith.constant dense<0.000000e+00> : vector<8x768xf32>
    %22 = tpu.matmul %21, %19, %cst_16 {dimension_numbers = #tpu.dot_dimension_numbers<[1], [0], [0], [1], [0, 0, 1, 1], [], []>} : vector<8x8xf32>, vector<8x768xf32>, vector<8x768xf32> -> vector<8x768xf32>
    %23 = arith.addf %18, %22 : vector<8x768xf32>
    %c4 = arith.constant 4 : index
    %c0_17 = arith.constant 0 : index
    %c0_18 = arith.constant 0 : index
    %24 = vector.load %arg3[%c4, %c0_17, %c0_18] : memref<9x8x8xf32, #tpu.memory_space<vmem>>, vector<1x8x8xf32>
    %25 = vector.shape_cast %24 : vector<1x8x8xf32> to vector<8x8xf32>
    %cst_19 = arith.constant dense<0.000000e+00> : vector<8x768xf32>
    %26 = tpu.matmul %25, %3, %cst_19 {dimension_numbers = #tpu.dot_dimension_numbers<[1], [0], [0], [1], [0, 0, 1, 1], [], []>} : vector<8x8xf32>, vector<8x768xf32>, vector<8x768xf32> -> vector<8x768xf32>
    %27 = arith.addf %23, %26 : vector<8x768xf32>
    %c767_i32 = arith.constant 767 : i32
    %28 = tpu.dynamic_rotate %3 by %c767_i32 dim 1 : vector<8x768xf32>, i32 -> vector<8x768xf32>
    %c5 = arith.constant 5 : index
    %c0_20 = arith.constant 0 : index
    %c0_21 = arith.constant 0 : index
    %29 = vector.load %arg3[%c5, %c0_20, %c0_21] : memref<9x8x8xf32, #tpu.memory_space<vmem>>, vector<1x8x8xf32>
    %30 = vector.shape_cast %29 : vector<1x8x8xf32> to vector<8x8xf32>
    %cst_22 = arith.constant dense<0.000000e+00> : vector<8x768xf32>
    %31 = tpu.matmul %30, %28, %cst_22 {dimension_numbers = #tpu.dot_dimension_numbers<[1], [0], [0], [1], [0, 0, 1, 1], [], []>} : vector<8x8xf32>, vector<8x768xf32>, vector<8x768xf32> -> vector<8x768xf32>
    %32 = arith.addf %27, %31 : vector<8x768xf32>
    %c751_i32 = arith.constant 751 : i32
    %33 = tpu.dynamic_rotate %3 by %c751_i32 dim 1 : vector<8x768xf32>, i32 -> vector<8x768xf32>
    %c6 = arith.constant 6 : index
    %c0_23 = arith.constant 0 : index
    %c0_24 = arith.constant 0 : index
    %34 = vector.load %arg3[%c6, %c0_23, %c0_24] : memref<9x8x8xf32, #tpu.memory_space<vmem>>, vector<1x8x8xf32>
    %35 = vector.shape_cast %34 : vector<1x8x8xf32> to vector<8x8xf32>
    %cst_25 = arith.constant dense<0.000000e+00> : vector<8x768xf32>
    %36 = tpu.matmul %35, %33, %cst_25 {dimension_numbers = #tpu.dot_dimension_numbers<[1], [0], [0], [1], [0, 0, 1, 1], [], []>} : vector<8x8xf32>, vector<8x768xf32>, vector<8x768xf32> -> vector<8x768xf32>
    %37 = arith.addf %32, %36 : vector<8x768xf32>
    %c750_i32 = arith.constant 750 : i32
    %38 = tpu.dynamic_rotate %3 by %c750_i32 dim 1 : vector<8x768xf32>, i32 -> vector<8x768xf32>
    %c7 = arith.constant 7 : index
    %c0_26 = arith.constant 0 : index
    %c0_27 = arith.constant 0 : index
    %39 = vector.load %arg3[%c7, %c0_26, %c0_27] : memref<9x8x8xf32, #tpu.memory_space<vmem>>, vector<1x8x8xf32>
    %40 = vector.shape_cast %39 : vector<1x8x8xf32> to vector<8x8xf32>
    %cst_28 = arith.constant dense<0.000000e+00> : vector<8x768xf32>
    %41 = tpu.matmul %40, %38, %cst_28 {dimension_numbers = #tpu.dot_dimension_numbers<[1], [0], [0], [1], [0, 0, 1, 1], [], []>} : vector<8x8xf32>, vector<8x768xf32>, vector<8x768xf32> -> vector<8x768xf32>
    %42 = arith.addf %37, %41 : vector<8x768xf32>
    %c749_i32 = arith.constant 749 : i32
    %43 = tpu.dynamic_rotate %3 by %c749_i32 dim 1 : vector<8x768xf32>, i32 -> vector<8x768xf32>
    %c8 = arith.constant 8 : index
    %c0_29 = arith.constant 0 : index
    %c0_30 = arith.constant 0 : index
    %44 = vector.load %arg3[%c8, %c0_29, %c0_30] : memref<9x8x8xf32, #tpu.memory_space<vmem>>, vector<1x8x8xf32>
    %45 = vector.shape_cast %44 : vector<1x8x8xf32> to vector<8x8xf32>
    %cst_31 = arith.constant dense<0.000000e+00> : vector<8x768xf32>
    %46 = tpu.matmul %45, %43, %cst_31 {dimension_numbers = #tpu.dot_dimension_numbers<[1], [0], [0], [1], [0, 0, 1, 1], [], []>} : vector<8x8xf32>, vector<8x768xf32>, vector<8x768xf32> -> vector<8x768xf32>
    %47 = arith.addf %42, %46 : vector<8x768xf32>
    %48 = vector.broadcast %4 : vector<8x1xf32> to vector<8x768xf32>
    %49 = arith.addf %47, %48 : vector<8x768xf32>
    %cst_32 = arith.constant 0.000000e+00 : f32
    %50 = vector.broadcast %cst_32 : f32 to vector<8x768xf32>
    %51 = arith.maximumf %49, %50 : vector<8x768xf32>
    %52 = arith.mulf %51, %2 : vector<8x768xf32>
    %c0_33 = arith.constant 0 : index
    %c0_34 = arith.constant 0 : index
    %53 = vector.load %arg6[%c0_33, %c0_34] : memref<8x1xf32, #tpu.memory_space<vmem>>, vector<8x1xf32>
    %c19_i32_35 = arith.constant 19 : i32
    %54 = tpu.dynamic_rotate %52 by %c19_i32_35 dim 1 : vector<8x768xf32>, i32 -> vector<8x768xf32>
    %c0_36 = arith.constant 0 : index
    %c0_37 = arith.constant 0 : index
    %c0_38 = arith.constant 0 : index
    %55 = vector.load %arg5[%c0_36, %c0_37, %c0_38] : memref<9x8x8xf32, #tpu.memory_space<vmem>>, vector<1x8x8xf32>
    %56 = vector.shape_cast %55 : vector<1x8x8xf32> to vector<8x8xf32>
    %cst_39 = arith.constant dense<0.000000e+00> : vector<8x768xf32>
    %57 = tpu.matmul %56, %54, %cst_39 {dimension_numbers = #tpu.dot_dimension_numbers<[1], [0], [0], [1], [0, 0, 1, 1], [], []>} : vector<8x8xf32>, vector<8x768xf32>, vector<8x768xf32> -> vector<8x768xf32>
    %c18_i32_40 = arith.constant 18 : i32
    %58 = tpu.dynamic_rotate %52 by %c18_i32_40 dim 1 : vector<8x768xf32>, i32 -> vector<8x768xf32>
    %c1_41 = arith.constant 1 : index
    %c0_42 = arith.constant 0 : index
    %c0_43 = arith.constant 0 : index
    %59 = vector.load %arg5[%c1_41, %c0_42, %c0_43] : memref<9x8x8xf32, #tpu.memory_space<vmem>>, vector<1x8x8xf32>
    %60 = vector.shape_cast %59 : vector<1x8x8xf32> to vector<8x8xf32>
    %cst_44 = arith.constant dense<0.000000e+00> : vector<8x768xf32>
    %61 = tpu.matmul %60, %58, %cst_44 {dimension_numbers = #tpu.dot_dimension_numbers<[1], [0], [0], [1], [0, 0, 1, 1], [], []>} : vector<8x8xf32>, vector<8x768xf32>, vector<8x768xf32> -> vector<8x768xf32>
    %62 = arith.addf %57, %61 : vector<8x768xf32>
    %c17_i32_45 = arith.constant 17 : i32
    %63 = tpu.dynamic_rotate %52 by %c17_i32_45 dim 1 : vector<8x768xf32>, i32 -> vector<8x768xf32>
    %c2_46 = arith.constant 2 : index
    %c0_47 = arith.constant 0 : index
    %c0_48 = arith.constant 0 : index
    %64 = vector.load %arg5[%c2_46, %c0_47, %c0_48] : memref<9x8x8xf32, #tpu.memory_space<vmem>>, vector<1x8x8xf32>
    %65 = vector.shape_cast %64 : vector<1x8x8xf32> to vector<8x8xf32>
    %cst_49 = arith.constant dense<0.000000e+00> : vector<8x768xf32>
    %66 = tpu.matmul %65, %63, %cst_49 {dimension_numbers = #tpu.dot_dimension_numbers<[1], [0], [0], [1], [0, 0, 1, 1], [], []>} : vector<8x8xf32>, vector<8x768xf32>, vector<8x768xf32> -> vector<8x768xf32>
    %67 = arith.addf %62, %66 : vector<8x768xf32>
    %c1_i32_50 = arith.constant 1 : i32
    %68 = tpu.dynamic_rotate %52 by %c1_i32_50 dim 1 : vector<8x768xf32>, i32 -> vector<8x768xf32>
    %c3_51 = arith.constant 3 : index
    %c0_52 = arith.constant 0 : index
    %c0_53 = arith.constant 0 : index
    %69 = vector.load %arg5[%c3_51, %c0_52, %c0_53] : memref<9x8x8xf32, #tpu.memory_space<vmem>>, vector<1x8x8xf32>
    %70 = vector.shape_cast %69 : vector<1x8x8xf32> to vector<8x8xf32>
    %cst_54 = arith.constant dense<0.000000e+00> : vector<8x768xf32>
    %71 = tpu.matmul %70, %68, %cst_54 {dimension_numbers = #tpu.dot_dimension_numbers<[1], [0], [0], [1], [0, 0, 1, 1], [], []>} : vector<8x8xf32>, vector<8x768xf32>, vector<8x768xf32> -> vector<8x768xf32>
    %72 = arith.addf %67, %71 : vector<8x768xf32>
    %c4_55 = arith.constant 4 : index
    %c0_56 = arith.constant 0 : index
    %c0_57 = arith.constant 0 : index
    %73 = vector.load %arg5[%c4_55, %c0_56, %c0_57] : memref<9x8x8xf32, #tpu.memory_space<vmem>>, vector<1x8x8xf32>
    %74 = vector.shape_cast %73 : vector<1x8x8xf32> to vector<8x8xf32>
    %cst_58 = arith.constant dense<0.000000e+00> : vector<8x768xf32>
    %75 = tpu.matmul %74, %52, %cst_58 {dimension_numbers = #tpu.dot_dimension_numbers<[1], [0], [0], [1], [0, 0, 1, 1], [], []>} : vector<8x8xf32>, vector<8x768xf32>, vector<8x768xf32> -> vector<8x768xf32>
    %76 = arith.addf %72, %75 : vector<8x768xf32>
    %c767_i32_59 = arith.constant 767 : i32
    %77 = tpu.dynamic_rotate %52 by %c767_i32_59 dim 1 : vector<8x768xf32>, i32 -> vector<8x768xf32>
    %c5_60 = arith.constant 5 : index
    %c0_61 = arith.constant 0 : index
    %c0_62 = arith.constant 0 : index
    %78 = vector.load %arg5[%c5_60, %c0_61, %c0_62] : memref<9x8x8xf32, #tpu.memory_space<vmem>>, vector<1x8x8xf32>
    %79 = vector.shape_cast %78 : vector<1x8x8xf32> to vector<8x8xf32>
    %cst_63 = arith.constant dense<0.000000e+00> : vector<8x768xf32>
    %80 = tpu.matmul %79, %77, %cst_63 {dimension_numbers = #tpu.dot_dimension_numbers<[1], [0], [0], [1], [0, 0, 1, 1], [], []>} : vector<8x8xf32>, vector<8x768xf32>, vector<8x768xf32> -> vector<8x768xf32>
    %81 = arith.addf %76, %80 : vector<8x768xf32>
    %c751_i32_64 = arith.constant 751 : i32
    %82 = tpu.dynamic_rotate %52 by %c751_i32_64 dim 1 : vector<8x768xf32>, i32 -> vector<8x768xf32>
    %c6_65 = arith.constant 6 : index
    %c0_66 = arith.constant 0 : index
    %c0_67 = arith.constant 0 : index
    %83 = vector.load %arg5[%c6_65, %c0_66, %c0_67] : memref<9x8x8xf32, #tpu.memory_space<vmem>>, vector<1x8x8xf32>
    %84 = vector.shape_cast %83 : vector<1x8x8xf32> to vector<8x8xf32>
    %cst_68 = arith.constant dense<0.000000e+00> : vector<8x768xf32>
    %85 = tpu.matmul %84, %82, %cst_68 {dimension_numbers = #tpu.dot_dimension_numbers<[1], [0], [0], [1], [0, 0, 1, 1], [], []>} : vector<8x8xf32>, vector<8x768xf32>, vector<8x768xf32> -> vector<8x768xf32>
    %86 = arith.addf %81, %85 : vector<8x768xf32>
    %c750_i32_69 = arith.constant 750 : i32
    %87 = tpu.dynamic_rotate %52 by %c750_i32_69 dim 1 : vector<8x768xf32>, i32 -> vector<8x768xf32>
    %c7_70 = arith.constant 7 : index
    %c0_71 = arith.constant 0 : index
    %c0_72 = arith.constant 0 : index
    %88 = vector.load %arg5[%c7_70, %c0_71, %c0_72] : memref<9x8x8xf32, #tpu.memory_space<vmem>>, vector<1x8x8xf32>
    %89 = vector.shape_cast %88 : vector<1x8x8xf32> to vector<8x8xf32>
    %cst_73 = arith.constant dense<0.000000e+00> : vector<8x768xf32>
    %90 = tpu.matmul %89, %87, %cst_73 {dimension_numbers = #tpu.dot_dimension_numbers<[1], [0], [0], [1], [0, 0, 1, 1], [], []>} : vector<8x8xf32>, vector<8x768xf32>, vector<8x768xf32> -> vector<8x768xf32>
    %91 = arith.addf %86, %90 : vector<8x768xf32>
    %c749_i32_74 = arith.constant 749 : i32
    %92 = tpu.dynamic_rotate %52 by %c749_i32_74 dim 1 : vector<8x768xf32>, i32 -> vector<8x768xf32>
    %c8_75 = arith.constant 8 : index
    %c0_76 = arith.constant 0 : index
    %c0_77 = arith.constant 0 : index
    %93 = vector.load %arg5[%c8_75, %c0_76, %c0_77] : memref<9x8x8xf32, #tpu.memory_space<vmem>>, vector<1x8x8xf32>
    %94 = vector.shape_cast %93 : vector<1x8x8xf32> to vector<8x8xf32>
    %cst_78 = arith.constant dense<0.000000e+00> : vector<8x768xf32>
    %95 = tpu.matmul %94, %92, %cst_78 {dimension_numbers = #tpu.dot_dimension_numbers<[1], [0], [0], [1], [0, 0, 1, 1], [], []>} : vector<8x8xf32>, vector<8x768xf32>, vector<8x768xf32> -> vector<8x768xf32>
    %96 = arith.addf %91, %95 : vector<8x768xf32>
    %97 = vector.broadcast %53 : vector<8x1xf32> to vector<8x768xf32>
    %98 = arith.addf %96, %97 : vector<8x768xf32>
    %cst_79 = arith.constant 0.000000e+00 : f32
    %99 = vector.broadcast %cst_79 : f32 to vector<8x768xf32>
    %100 = arith.maximumf %98, %99 : vector<8x768xf32>
    %101 = arith.mulf %100, %2 : vector<8x768xf32>
    %c0_80 = arith.constant 0 : index
    %c0_81 = arith.constant 0 : index
    %102 = vector.load %arg8[%c0_80, %c0_81] : memref<8x1xf32, #tpu.memory_space<vmem>>, vector<8x1xf32>
    %c19_i32_82 = arith.constant 19 : i32
    %103 = tpu.dynamic_rotate %101 by %c19_i32_82 dim 1 : vector<8x768xf32>, i32 -> vector<8x768xf32>
    %c0_83 = arith.constant 0 : index
    %c0_84 = arith.constant 0 : index
    %c0_85 = arith.constant 0 : index
    %104 = vector.load %arg7[%c0_83, %c0_84, %c0_85] : memref<9x8x8xf32, #tpu.memory_space<vmem>>, vector<1x8x8xf32>
    %105 = vector.shape_cast %104 : vector<1x8x8xf32> to vector<8x8xf32>
    %cst_86 = arith.constant dense<0.000000e+00> : vector<8x768xf32>
    %106 = tpu.matmul %105, %103, %cst_86 {dimension_numbers = #tpu.dot_dimension_numbers<[1], [0], [0], [1], [0, 0, 1, 1], [], []>} : vector<8x8xf32>, vector<8x768xf32>, vector<8x768xf32> -> vector<8x768xf32>
    %c18_i32_87 = arith.constant 18 : i32
    %107 = tpu.dynamic_rotate %101 by %c18_i32_87 dim 1 : vector<8x768xf32>, i32 -> vector<8x768xf32>
    %c1_88 = arith.constant 1 : index
    %c0_89 = arith.constant 0 : index
    %c0_90 = arith.constant 0 : index
    %108 = vector.load %arg7[%c1_88, %c0_89, %c0_90] : memref<9x8x8xf32, #tpu.memory_space<vmem>>, vector<1x8x8xf32>
    %109 = vector.shape_cast %108 : vector<1x8x8xf32> to vector<8x8xf32>
    %cst_91 = arith.constant dense<0.000000e+00> : vector<8x768xf32>
    %110 = tpu.matmul %109, %107, %cst_91 {dimension_numbers = #tpu.dot_dimension_numbers<[1], [0], [0], [1], [0, 0, 1, 1], [], []>} : vector<8x8xf32>, vector<8x768xf32>, vector<8x768xf32> -> vector<8x768xf32>
    %111 = arith.addf %106, %110 : vector<8x768xf32>
    %c17_i32_92 = arith.constant 17 : i32
    %112 = tpu.dynamic_rotate %101 by %c17_i32_92 dim 1 : vector<8x768xf32>, i32 -> vector<8x768xf32>
    %c2_93 = arith.constant 2 : index
    %c0_94 = arith.constant 0 : index
    %c0_95 = arith.constant 0 : index
    %113 = vector.load %arg7[%c2_93, %c0_94, %c0_95] : memref<9x8x8xf32, #tpu.memory_space<vmem>>, vector<1x8x8xf32>
    %114 = vector.shape_cast %113 : vector<1x8x8xf32> to vector<8x8xf32>
    %cst_96 = arith.constant dense<0.000000e+00> : vector<8x768xf32>
    %115 = tpu.matmul %114, %112, %cst_96 {dimension_numbers = #tpu.dot_dimension_numbers<[1], [0], [0], [1], [0, 0, 1, 1], [], []>} : vector<8x8xf32>, vector<8x768xf32>, vector<8x768xf32> -> vector<8x768xf32>
    %116 = arith.addf %111, %115 : vector<8x768xf32>
    %c1_i32_97 = arith.constant 1 : i32
    %117 = tpu.dynamic_rotate %101 by %c1_i32_97 dim 1 : vector<8x768xf32>, i32 -> vector<8x768xf32>
    %c3_98 = arith.constant 3 : index
    %c0_99 = arith.constant 0 : index
    %c0_100 = arith.constant 0 : index
    %118 = vector.load %arg7[%c3_98, %c0_99, %c0_100] : memref<9x8x8xf32, #tpu.memory_space<vmem>>, vector<1x8x8xf32>
    %119 = vector.shape_cast %118 : vector<1x8x8xf32> to vector<8x8xf32>
    %cst_101 = arith.constant dense<0.000000e+00> : vector<8x768xf32>
    %120 = tpu.matmul %119, %117, %cst_101 {dimension_numbers = #tpu.dot_dimension_numbers<[1], [0], [0], [1], [0, 0, 1, 1], [], []>} : vector<8x8xf32>, vector<8x768xf32>, vector<8x768xf32> -> vector<8x768xf32>
    %121 = arith.addf %116, %120 : vector<8x768xf32>
    %c4_102 = arith.constant 4 : index
    %c0_103 = arith.constant 0 : index
    %c0_104 = arith.constant 0 : index
    %122 = vector.load %arg7[%c4_102, %c0_103, %c0_104] : memref<9x8x8xf32, #tpu.memory_space<vmem>>, vector<1x8x8xf32>
    %123 = vector.shape_cast %122 : vector<1x8x8xf32> to vector<8x8xf32>
    %cst_105 = arith.constant dense<0.000000e+00> : vector<8x768xf32>
    %124 = tpu.matmul %123, %101, %cst_105 {dimension_numbers = #tpu.dot_dimension_numbers<[1], [0], [0], [1], [0, 0, 1, 1], [], []>} : vector<8x8xf32>, vector<8x768xf32>, vector<8x768xf32> -> vector<8x768xf32>
    %125 = arith.addf %121, %124 : vector<8x768xf32>
    %c767_i32_106 = arith.constant 767 : i32
    %126 = tpu.dynamic_rotate %101 by %c767_i32_106 dim 1 : vector<8x768xf32>, i32 -> vector<8x768xf32>
    %c5_107 = arith.constant 5 : index
    %c0_108 = arith.constant 0 : index
    %c0_109 = arith.constant 0 : index
    %127 = vector.load %arg7[%c5_107, %c0_108, %c0_109] : memref<9x8x8xf32, #tpu.memory_space<vmem>>, vector<1x8x8xf32>
    %128 = vector.shape_cast %127 : vector<1x8x8xf32> to vector<8x8xf32>
    %cst_110 = arith.constant dense<0.000000e+00> : vector<8x768xf32>
    %129 = tpu.matmul %128, %126, %cst_110 {dimension_numbers = #tpu.dot_dimension_numbers<[1], [0], [0], [1], [0, 0, 1, 1], [], []>} : vector<8x8xf32>, vector<8x768xf32>, vector<8x768xf32> -> vector<8x768xf32>
    %130 = arith.addf %125, %129 : vector<8x768xf32>
    %c751_i32_111 = arith.constant 751 : i32
    %131 = tpu.dynamic_rotate %101 by %c751_i32_111 dim 1 : vector<8x768xf32>, i32 -> vector<8x768xf32>
    %c6_112 = arith.constant 6 : index
    %c0_113 = arith.constant 0 : index
    %c0_114 = arith.constant 0 : index
    %132 = vector.load %arg7[%c6_112, %c0_113, %c0_114] : memref<9x8x8xf32, #tpu.memory_space<vmem>>, vector<1x8x8xf32>
    %133 = vector.shape_cast %132 : vector<1x8x8xf32> to vector<8x8xf32>
    %cst_115 = arith.constant dense<0.000000e+00> : vector<8x768xf32>
    %134 = tpu.matmul %133, %131, %cst_115 {dimension_numbers = #tpu.dot_dimension_numbers<[1], [0], [0], [1], [0, 0, 1, 1], [], []>} : vector<8x8xf32>, vector<8x768xf32>, vector<8x768xf32> -> vector<8x768xf32>
    %135 = arith.addf %130, %134 : vector<8x768xf32>
    %c750_i32_116 = arith.constant 750 : i32
    %136 = tpu.dynamic_rotate %101 by %c750_i32_116 dim 1 : vector<8x768xf32>, i32 -> vector<8x768xf32>
    %c7_117 = arith.constant 7 : index
    %c0_118 = arith.constant 0 : index
    %c0_119 = arith.constant 0 : index
    %137 = vector.load %arg7[%c7_117, %c0_118, %c0_119] : memref<9x8x8xf32, #tpu.memory_space<vmem>>, vector<1x8x8xf32>
    %138 = vector.shape_cast %137 : vector<1x8x8xf32> to vector<8x8xf32>
    %cst_120 = arith.constant dense<0.000000e+00> : vector<8x768xf32>
    %139 = tpu.matmul %138, %136, %cst_120 {dimension_numbers = #tpu.dot_dimension_numbers<[1], [0], [0], [1], [0, 0, 1, 1], [], []>} : vector<8x8xf32>, vector<8x768xf32>, vector<8x768xf32> -> vector<8x768xf32>
    %140 = arith.addf %135, %139 : vector<8x768xf32>
    %c749_i32_121 = arith.constant 749 : i32
    %141 = tpu.dynamic_rotate %101 by %c749_i32_121 dim 1 : vector<8x768xf32>, i32 -> vector<8x768xf32>
    %c8_122 = arith.constant 8 : index
    %c0_123 = arith.constant 0 : index
    %c0_124 = arith.constant 0 : index
    %142 = vector.load %arg7[%c8_122, %c0_123, %c0_124] : memref<9x8x8xf32, #tpu.memory_space<vmem>>, vector<1x8x8xf32>
    %143 = vector.shape_cast %142 : vector<1x8x8xf32> to vector<8x8xf32>
    %cst_125 = arith.constant dense<0.000000e+00> : vector<8x768xf32>
    %144 = tpu.matmul %143, %141, %cst_125 {dimension_numbers = #tpu.dot_dimension_numbers<[1], [0], [0], [1], [0, 0, 1, 1], [], []>} : vector<8x8xf32>, vector<8x768xf32>, vector<8x768xf32> -> vector<8x768xf32>
    %145 = arith.addf %140, %144 : vector<8x768xf32>
    %146 = vector.broadcast %102 : vector<8x1xf32> to vector<8x768xf32>
    %147 = arith.addf %145, %146 : vector<8x768xf32>
    %cst_126 = arith.constant 0.000000e+00 : f32
    %148 = vector.broadcast %cst_126 : f32 to vector<8x768xf32>
    %149 = arith.maximumf %147, %148 : vector<8x768xf32>
    %150 = arith.mulf %149, %2 : vector<8x768xf32>
    %c0_127 = arith.constant 0 : index
    %c0_128 = arith.constant 0 : index
    %151 = vector.load %arg10[%c0_127, %c0_128] : memref<8x1xf32, #tpu.memory_space<vmem>>, vector<8x1xf32>
    %c19_i32_129 = arith.constant 19 : i32
    %152 = tpu.dynamic_rotate %150 by %c19_i32_129 dim 1 : vector<8x768xf32>, i32 -> vector<8x768xf32>
    %c0_130 = arith.constant 0 : index
    %c0_131 = arith.constant 0 : index
    %c0_132 = arith.constant 0 : index
    %153 = vector.load %arg9[%c0_130, %c0_131, %c0_132] : memref<9x8x8xf32, #tpu.memory_space<vmem>>, vector<1x8x8xf32>
    %154 = vector.shape_cast %153 : vector<1x8x8xf32> to vector<8x8xf32>
    %cst_133 = arith.constant dense<0.000000e+00> : vector<8x768xf32>
    %155 = tpu.matmul %154, %152, %cst_133 {dimension_numbers = #tpu.dot_dimension_numbers<[1], [0], [0], [1], [0, 0, 1, 1], [], []>} : vector<8x8xf32>, vector<8x768xf32>, vector<8x768xf32> -> vector<8x768xf32>
    %c18_i32_134 = arith.constant 18 : i32
    %156 = tpu.dynamic_rotate %150 by %c18_i32_134 dim 1 : vector<8x768xf32>, i32 -> vector<8x768xf32>
    %c1_135 = arith.constant 1 : index
    %c0_136 = arith.constant 0 : index
    %c0_137 = arith.constant 0 : index
    %157 = vector.load %arg9[%c1_135, %c0_136, %c0_137] : memref<9x8x8xf32, #tpu.memory_space<vmem>>, vector<1x8x8xf32>
    %158 = vector.shape_cast %157 : vector<1x8x8xf32> to vector<8x8xf32>
    %cst_138 = arith.constant dense<0.000000e+00> : vector<8x768xf32>
    %159 = tpu.matmul %158, %156, %cst_138 {dimension_numbers = #tpu.dot_dimension_numbers<[1], [0], [0], [1], [0, 0, 1, 1], [], []>} : vector<8x8xf32>, vector<8x768xf32>, vector<8x768xf32> -> vector<8x768xf32>
    %160 = arith.addf %155, %159 : vector<8x768xf32>
    %c17_i32_139 = arith.constant 17 : i32
    %161 = tpu.dynamic_rotate %150 by %c17_i32_139 dim 1 : vector<8x768xf32>, i32 -> vector<8x768xf32>
    %c2_140 = arith.constant 2 : index
    %c0_141 = arith.constant 0 : index
    %c0_142 = arith.constant 0 : index
    %162 = vector.load %arg9[%c2_140, %c0_141, %c0_142] : memref<9x8x8xf32, #tpu.memory_space<vmem>>, vector<1x8x8xf32>
    %163 = vector.shape_cast %162 : vector<1x8x8xf32> to vector<8x8xf32>
    %cst_143 = arith.constant dense<0.000000e+00> : vector<8x768xf32>
    %164 = tpu.matmul %163, %161, %cst_143 {dimension_numbers = #tpu.dot_dimension_numbers<[1], [0], [0], [1], [0, 0, 1, 1], [], []>} : vector<8x8xf32>, vector<8x768xf32>, vector<8x768xf32> -> vector<8x768xf32>
    %165 = arith.addf %160, %164 : vector<8x768xf32>
    %c1_i32_144 = arith.constant 1 : i32
    %166 = tpu.dynamic_rotate %150 by %c1_i32_144 dim 1 : vector<8x768xf32>, i32 -> vector<8x768xf32>
    %c3_145 = arith.constant 3 : index
    %c0_146 = arith.constant 0 : index
    %c0_147 = arith.constant 0 : index
    %167 = vector.load %arg9[%c3_145, %c0_146, %c0_147] : memref<9x8x8xf32, #tpu.memory_space<vmem>>, vector<1x8x8xf32>
    %168 = vector.shape_cast %167 : vector<1x8x8xf32> to vector<8x8xf32>
    %cst_148 = arith.constant dense<0.000000e+00> : vector<8x768xf32>
    %169 = tpu.matmul %168, %166, %cst_148 {dimension_numbers = #tpu.dot_dimension_numbers<[1], [0], [0], [1], [0, 0, 1, 1], [], []>} : vector<8x8xf32>, vector<8x768xf32>, vector<8x768xf32> -> vector<8x768xf32>
    %170 = arith.addf %165, %169 : vector<8x768xf32>
    %c4_149 = arith.constant 4 : index
    %c0_150 = arith.constant 0 : index
    %c0_151 = arith.constant 0 : index
    %171 = vector.load %arg9[%c4_149, %c0_150, %c0_151] : memref<9x8x8xf32, #tpu.memory_space<vmem>>, vector<1x8x8xf32>
    %172 = vector.shape_cast %171 : vector<1x8x8xf32> to vector<8x8xf32>
    %cst_152 = arith.constant dense<0.000000e+00> : vector<8x768xf32>
    %173 = tpu.matmul %172, %150, %cst_152 {dimension_numbers = #tpu.dot_dimension_numbers<[1], [0], [0], [1], [0, 0, 1, 1], [], []>} : vector<8x8xf32>, vector<8x768xf32>, vector<8x768xf32> -> vector<8x768xf32>
    %174 = arith.addf %170, %173 : vector<8x768xf32>
    %c767_i32_153 = arith.constant 767 : i32
    %175 = tpu.dynamic_rotate %150 by %c767_i32_153 dim 1 : vector<8x768xf32>, i32 -> vector<8x768xf32>
    %c5_154 = arith.constant 5 : index
    %c0_155 = arith.constant 0 : index
    %c0_156 = arith.constant 0 : index
    %176 = vector.load %arg9[%c5_154, %c0_155, %c0_156] : memref<9x8x8xf32, #tpu.memory_space<vmem>>, vector<1x8x8xf32>
    %177 = vector.shape_cast %176 : vector<1x8x8xf32> to vector<8x8xf32>
    %cst_157 = arith.constant dense<0.000000e+00> : vector<8x768xf32>
    %178 = tpu.matmul %177, %175, %cst_157 {dimension_numbers = #tpu.dot_dimension_numbers<[1], [0], [0], [1], [0, 0, 1, 1], [], []>} : vector<8x8xf32>, vector<8x768xf32>, vector<8x768xf32> -> vector<8x768xf32>
    %179 = arith.addf %174, %178 : vector<8x768xf32>
    %c751_i32_158 = arith.constant 751 : i32
    %180 = tpu.dynamic_rotate %150 by %c751_i32_158 dim 1 : vector<8x768xf32>, i32 -> vector<8x768xf32>
    %c6_159 = arith.constant 6 : index
    %c0_160 = arith.constant 0 : index
    %c0_161 = arith.constant 0 : index
    %181 = vector.load %arg9[%c6_159, %c0_160, %c0_161] : memref<9x8x8xf32, #tpu.memory_space<vmem>>, vector<1x8x8xf32>
    %182 = vector.shape_cast %181 : vector<1x8x8xf32> to vector<8x8xf32>
    %cst_162 = arith.constant dense<0.000000e+00> : vector<8x768xf32>
    %183 = tpu.matmul %182, %180, %cst_162 {dimension_numbers = #tpu.dot_dimension_numbers<[1], [0], [0], [1], [0, 0, 1, 1], [], []>} : vector<8x8xf32>, vector<8x768xf32>, vector<8x768xf32> -> vector<8x768xf32>
    %184 = arith.addf %179, %183 : vector<8x768xf32>
    %c750_i32_163 = arith.constant 750 : i32
    %185 = tpu.dynamic_rotate %150 by %c750_i32_163 dim 1 : vector<8x768xf32>, i32 -> vector<8x768xf32>
    %c7_164 = arith.constant 7 : index
    %c0_165 = arith.constant 0 : index
    %c0_166 = arith.constant 0 : index
    %186 = vector.load %arg9[%c7_164, %c0_165, %c0_166] : memref<9x8x8xf32, #tpu.memory_space<vmem>>, vector<1x8x8xf32>
    %187 = vector.shape_cast %186 : vector<1x8x8xf32> to vector<8x8xf32>
    %cst_167 = arith.constant dense<0.000000e+00> : vector<8x768xf32>
    %188 = tpu.matmul %187, %185, %cst_167 {dimension_numbers = #tpu.dot_dimension_numbers<[1], [0], [0], [1], [0, 0, 1, 1], [], []>} : vector<8x8xf32>, vector<8x768xf32>, vector<8x768xf32> -> vector<8x768xf32>
    %189 = arith.addf %184, %188 : vector<8x768xf32>
    %c749_i32_168 = arith.constant 749 : i32
    %190 = tpu.dynamic_rotate %150 by %c749_i32_168 dim 1 : vector<8x768xf32>, i32 -> vector<8x768xf32>
    %c8_169 = arith.constant 8 : index
    %c0_170 = arith.constant 0 : index
    %c0_171 = arith.constant 0 : index
    %191 = vector.load %arg9[%c8_169, %c0_170, %c0_171] : memref<9x8x8xf32, #tpu.memory_space<vmem>>, vector<1x8x8xf32>
    %192 = vector.shape_cast %191 : vector<1x8x8xf32> to vector<8x8xf32>
    %cst_172 = arith.constant dense<0.000000e+00> : vector<8x768xf32>
    %193 = tpu.matmul %192, %190, %cst_172 {dimension_numbers = #tpu.dot_dimension_numbers<[1], [0], [0], [1], [0, 0, 1, 1], [], []>} : vector<8x8xf32>, vector<8x768xf32>, vector<8x768xf32> -> vector<8x768xf32>
    %194 = arith.addf %189, %193 : vector<8x768xf32>
    %195 = vector.broadcast %151 : vector<8x1xf32> to vector<8x768xf32>
    %196 = arith.addf %194, %195 : vector<8x768xf32>
    %c0_173 = arith.constant 0 : index
    %c0_174 = arith.constant 0 : index
    %197 = vector.load %arg11[%c0_173, %c0_174] : memref<8x768xf32, #tpu.memory_space<vmem>>, vector<8x768xf32>
    tpu.vector_store %arg11[%c0_173, %c0_174], %196 {strides = array<i32>} : memref<8x768xf32, #tpu.memory_space<vmem>>, vector<8x768xf32>,
    return
  }
  func.func @transform_0(%arg0: i32) -> (i32, i32) {
    %c0_i32 = arith.constant 0 : i32
    %c0_i32_0 = arith.constant 0 : i32
    return %c0_i32, %arg0 : i32, i32
  }
  func.func @transform_1(%arg0: i32) -> (i32, i32) {
    %c0_i32 = arith.constant 0 : i32
    %c0_i32_0 = arith.constant 0 : i32
    %c0_i32_1 = arith.constant 0 : i32
    return %c0_i32, %c0_i32_0 : i32, i32
  }
  func.func @transform_2(%arg0: i32) -> (i32, i32, i32) {
    %c0_i32 = arith.constant 0 : i32
    %c0_i32_0 = arith.constant 0 : i32
    %c0_i32_1 = arith.constant 0 : i32
    %c0_i32_2 = arith.constant 0 : i32
    return %c0_i32, %c0_i32_0, %c0_i32_1 : i32, i32, i32
  }
  func.func @transform_3(%arg0: i32) -> (i32, i32) {
    %c0_i32 = arith.constant 0 : i32
    %c0_i32_0 = arith.constant 0 : i32
    %c0_i32_1 = arith.constant 0 : i32
    return %c0_i32, %c0_i32_0 : i32, i32
  }
  func.func @transform_4(%arg0: i32) -> (i32, i32, i32) {
    %c0_i32 = arith.constant 0 : i32
    %c0_i32_0 = arith.constant 0 : i32
    %c0_i32_1 = arith.constant 0 : i32
    %c0_i32_2 = arith.constant 0 : i32
    return %c0_i32, %c0_i32_0, %c0_i32_1 : i32, i32, i32
  }
  func.func @transform_5(%arg0: i32) -> (i32, i32) {
    %c0_i32 = arith.constant 0 : i32
    %c0_i32_0 = arith.constant 0 : i32
    %c0_i32_1 = arith.constant 0 : i32
    return %c0_i32, %c0_i32_0 : i32, i32
  }
  func.func @transform_6(%arg0: i32) -> (i32, i32, i32) {
    %c0_i32 = arith.constant 0 : i32
    %c0_i32_0 = arith.constant 0 : i32
    %c0_i32_1 = arith.constant 0 : i32
    %c0_i32_2 = arith.constant 0 : i32
    return %c0_i32, %c0_i32_0, %c0_i32_1 : i32, i32, i32
  }
  func.func @transform_7(%arg0: i32) -> (i32, i32) {
    %c0_i32 = arith.constant 0 : i32
    %c0_i32_0 = arith.constant 0 : i32
    %c0_i32_1 = arith.constant 0 : i32
    return %c0_i32, %c0_i32_0 : i32, i32
  }
  func.func @transform_8(%arg0: i32) -> (i32, i32, i32) {
    %c0_i32 = arith.constant 0 : i32
    %c0_i32_0 = arith.constant 0 : i32
    %c0_i32_1 = arith.constant 0 : i32
    %c0_i32_2 = arith.constant 0 : i32
    return %c0_i32, %c0_i32_0, %c0_i32_1 : i32, i32, i32
  }
  func.func @transform_9(%arg0: i32) -> (i32, i32) {
    %c0_i32 = arith.constant 0 : i32
    %c0_i32_0 = arith.constant 0 : i32
    %c0_i32_1 = arith.constant 0 : i32
    return %c0_i32, %c0_i32_0 : i32, i32
  }
  func.func @transform_10(%arg0: i32) -> (i32, i32) {
    %c0_i32 = arith.constant 0 : i32
    %c0_i32_0 = arith.constant 0 : i32
    return %c0_i32, %arg0 : i32, i32
  }
}

</mosaic_0001>

<bundles_post_ra>
// kernel: tpu_custom_call.1
= control target key start
LH: loop header
LB: loop body
LE: loop exit
PB: predicated region body
PF: predicated region fallthrough
CT: control target
= control target key end

     0   :  { %s9146_s17 = smov 18   ;;  %v9147_v4 = vmov 0.0   ;;  %s10463_s0 = inlined_call_operand.vmem [shape: f32[8,768], index: 0, kind: input, shape index: {}]   ;;  %s10464_s1 = inlined_call_operand.vmem [shape: f32[1,768], index: 1, kind: input, shape index: {}]   ;;  %s10465_s2 = inlined_call_operand.vmem [shape: f32[9,8,8], index: 2, kind: input, shape index: {}]   ;;  %s10466_s3 = inlined_call_operand.vmem [shape: f32[8,1], index: 3, kind: input, shape index: {}]   ;;  %s10467_s4 = inlined_call_operand.vmem [shape: f32[9,8,8], index: 4, kind: input, shape index: {}]   ;;  %s10468_s5 = inlined_call_operand.vmem [shape: f32[8,1], index: 5, kind: input, shape index: {}]   ;;  %s10469_s6 = inlined_call_operand.vmem [shape: f32[9,8,8], index: 6, kind: input, shape index: {}]   ;;  %s10470_s7 = inlined_call_operand.vmem [shape: f32[8,1], index: 7, kind: input, shape index: {}]   ;;  %s10471_s8 = inlined_call_operand.vmem [shape: f32[9,8,8], index: 8, kind: input, shape index: {}]   ;;  %s10472_s9 = inlined_call_operand.vmem [shape: f32[8,1], index: 9, kind: input, shape index: {}]   ;;  %s10473_s10 = inlined_call_operand.hbm [shape: f32[8,768], index: 10, kind: output, shape index: {}]  }
   0x1   :  { %v9215_v0 = vld [vmem:[%s10463_s0 + $0x28] sm:$0xff]  ;;  %v9220_v1 = vld [vmem:[%s10463_s0] sm:$0xff]  ;;  %v9229_v2 = vld [vmem:[%s10463_s0 + $0x10] sm:$0xff]  ;;  %186 = vmatprep.mubr.f32.mxu0 %v9147_v4  ;;  %2363 = vmatprep.mubr.f32.mxu1 %v9147_v4 }
   0x2   :  { %107 = vrot.lane.b32.xlu1 %v9215_v0, %s9146_s17  ;;  %97 = vrot.lane.b32.xlu0 %v9220_v1, %s9146_s17  ;;  %v9234_v3 = vld [vmem:[%s10463_s0 + $0x8] sm:$0xff] }
   0x3   :  { %15 = vsyncpa [#allocation3], 0  ;;  %v9245_v5 = vld [vmem:[%s10463_s0 + $0x20] sm:$0xff]  ;;  %v9250_v6 = vld [vmem:[%s10463_s0 + $0x18] sm:$0xff]  ;;  %s9148_s26 = smov 19   ;;  %s9149_s0 = smov 17   ;;  %v38_v9 = vlaneseq }
   0x4   :  { %s9150_s27 = smov 1   ;;  %s9151_s28 = smov 127   ;;  %v74_v7 = vld [vmem:[%s10466_s3] sm:$0xff]  ;;  %v9155_v8 = vmov 0   ;;  %v8777_v16 = vld [vmem:[%s10465_s2 + $0x8] sm:$0xff]  ;;  %vm118_vm1 = vcmask 64512  }
   0x5   :  { %s9152_s29 = smov 111   ;;  %s9153_s30 = smov 110   ;;  %9120 = vset.pattern.permute.xlu0 %v9155_v8  ;;  %9121 = vset.pattern.permute.xlu1 %v9155_v8  ;;  %v9344_v10 = vand.u32 127, %v38_v9  ;;  %v96_v30 = vld [vmem:[%s10465_s2] sm:$0xff]  ;;  %v8784_v43 = vld [vmem:[%s10465_s2 + $0x10] sm:$0xff]  ;;  %v8788_v56 = vld [vmem:[%s10465_s2 + $0x18] sm:$0xff] }
   0x6   :  { %101 = vrot.lane.b32.xlu1 %v9229_v2, %s9146_s17  ;;  %99 = vrot.lane.b32.xlu0 %v9234_v3, %s9146_s17  ;;  %s9154_s11 = smov 109  }
   0x7   :  { %vm109_vm0 = vcmp.lt.s32.totalorder %v9344_v10, 18  ;;  %vm89_vm2 = vcmp.lt.s32.totalorder %v9344_v10, 19  ;;  %vm563_vm3 = vcmp.lt.s32.totalorder %v9344_v10, 17  ;;  %vm806_vm4 = vcmp.lt.s32.totalorder %v9344_v10, 1 }
   0x8   :  { %vm1273_vm5 = vcmp.lt.s32.totalorder %v9344_v10, 127  ;;  %vm1516_vm6 = vcmp.lt.s32.totalorder %v9344_v10, 111  ;;  %vm1759_vm7 = vcmp.lt.s32.totalorder %v9344_v10, 110  ;;  %vm2002_vm8 = vcmp.lt.s32.totalorder %v9344_v10, 109 }
   0xa   :  { %105 = vrot.lane.b32.xlu1 %v9245_v5, %s9146_s17  ;;  %103 = vrot.lane.b32.xlu0 %v9250_v6, %s9146_s17 }
   0xe   :  { %77 = vrot.lane.b32.xlu1 %v9234_v3, %s9148_s26  ;;  %75 = vrot.lane.b32.xlu0 %v9220_v1, %s9148_s26 }
  0x12   :  { %79 = vrot.lane.b32.xlu1 %v9229_v2, %s9148_s26  ;;  %85 = vrot.lane.b32.xlu0 %v9215_v0, %s9148_s26 }
  0x16   :  { %83 = vrot.lane.b32.xlu1 %v9245_v5, %s9148_s26  ;;  %81 = vrot.lane.b32.xlu0 %v9250_v6, %s9148_s26 }
  0x1a   :  { %553 = vrot.lane.b32.xlu1 %v9234_v3, %s9149_s0  ;;  %551 = vrot.lane.b32.xlu0 %v9220_v1, %s9149_s0 }
  0x1e   :  { %555 = vrot.lane.b32.xlu1 %v9229_v2, %s9149_s0  ;;  %561 = vrot.lane.b32.xlu0 %v9215_v0, %s9149_s0 }
  0x22   :  { %559 = vrot.lane.b32.xlu1 %v9245_v5, %s9149_s0  ;;  %557 = vrot.lane.b32.xlu0 %v9250_v6, %s9149_s0 }
  0x26   :  { %796 = vrot.lane.b32.xlu1 %v9234_v3, %s9150_s27  ;;  %794 = vrot.lane.b32.xlu0 %v9220_v1, %s9150_s27 }
  0x2a   :  { %798 = vrot.lane.b32.xlu1 %v9229_v2, %s9150_s27  ;;  %804 = vrot.lane.b32.xlu0 %v9215_v0, %s9150_s27 }
  0x2e   :  { %802 = vrot.lane.b32.xlu1 %v9245_v5, %s9150_s27  ;;  %800 = vrot.lane.b32.xlu0 %v9250_v6, %s9150_s27 }
  0x32   :  { %1265 = vrot.lane.b32.xlu1 %v9229_v2, %s9151_s28  ;;  %1263 = vrot.lane.b32.xlu0 %v9234_v3, %s9151_s28 }
  0x36   :  { %1267 = vrot.lane.b32.xlu1 %v9250_v6, %s9151_s28  ;;  %1261 = vrot.lane.b32.xlu0 %v9220_v1, %s9151_s28 }
  0x3a   :  { %1271 = vrot.lane.b32.xlu1 %v9215_v0, %s9151_s28  ;;  %1269 = vrot.lane.b32.xlu0 %v9245_v5, %s9151_s28 }
  0x3e   :  { %1508 = vrot.lane.b32.xlu1 %v9229_v2, %s9152_s29  ;;  %1506 = vrot.lane.b32.xlu0 %v9234_v3, %s9152_s29 }
  0x42   :  { %1510 = vrot.lane.b32.xlu1 %v9250_v6, %s9152_s29  ;;  %1504 = vrot.lane.b32.xlu0 %v9220_v1, %s9152_s29 }
  0x46   :  { %1514 = vrot.lane.b32.xlu1 %v9215_v0, %s9152_s29  ;;  %1512 = vrot.lane.b32.xlu0 %v9245_v5, %s9152_s29 }
  0x4a   :  { %1751 = vrot.lane.b32.xlu1 %v9229_v2, %s9153_s30  ;;  %1749 = vrot.lane.b32.xlu0 %v9234_v3, %s9153_s30 }
  0x4e   :  { %1753 = vrot.lane.b32.xlu1 %v9250_v6, %s9153_s30  ;;  %1747 = vrot.lane.b32.xlu0 %v9220_v1, %s9153_s30 }
  0x52   :  { %1757 = vrot.lane.b32.xlu1 %v9215_v0, %s9153_s30  ;;  %1755 = vrot.lane.b32.xlu0 %v9245_v5, %s9153_s30 }
  0x56   :  { %1994 = vrot.lane.b32.xlu1 %v9229_v2, %s9154_s11  ;;  %1992 = vrot.lane.b32.xlu0 %v9234_v3, %s9154_s11 }
  0x5a   :  { %1996 = vrot.lane.b32.xlu1 %v9250_v6, %s9154_s11  ;;  %1990 = vrot.lane.b32.xlu0 %v9220_v1, %s9154_s11 }
  0x5e   :  { %2000 = vrot.lane.b32.xlu1 %v9215_v0, %s9154_s11  ;;  %1998 = vrot.lane.b32.xlu0 %v9245_v5, %s9154_s11 }
  0x62   :  { %2235 = vperm.xlu0 %9120, %v74_v7  }
  0x74   :  { %v108_v11 = vpop.permute.xlu1 %107  ;;  %v98_v12 = vpop.permute.xlu0 %97 }
  0x75   :  { %v115_v17 = vsel %vm109_vm0, %v108_v11, %v98_v12 }
  0x78   :  { %v102_v13 = vpop.permute.xlu1 %101  ;;  %v100_v14 = vpop.permute.xlu0 %99 }
  0x79   :  { %v114_v15 = vsel %vm109_vm0, %v98_v12, %v100_v14  ;;  %v113_v21 = vsel %vm109_vm0, %v100_v14, %v102_v13  ;;  %v8792_v12 = vld [vmem:[%s10465_s2 + $0x20] sm:$0xff] }
  0x7a   :  { %122 = vmatprep.subr.mxu0 %v114_v15 }
  0x7b   :  { %123 = vmatpush1.msra.mxu0 %v115_v17 }
  0x7c   :  { %v106_v18 = vpop.permute.xlu1 %105  ;;  %v104_v19 = vpop.permute.xlu0 %103  ;;  %8778 = vmatmul.mubr.msk.f32.vlgmr.msra.gmra.mrb[0].mxu0 %vm118_vm1, %v8777_v16 }
  0x7d   :  { %v112_v20 = vsel %vm109_vm0, %v102_v13, %v104_v19  ;;  %257 = vmatprep.mubr.f32.mxu0 %v9147_v4  ;;  %v110_v22 = vsel %vm109_vm0, %v106_v18, %v108_v11  ;;  %v111_v25 = vsel %vm109_vm0, %v104_v19, %v106_v18 }
  0x7e   :  { %193 = vmatprep.subr.mxu0 %v112_v20 }
  0x7f   :  { %194 = vmatpush1.msra.mxu0 %v113_v21 }
  0x80   :  { %v78_v23 = vpop.permute.xlu1 %77  ;;  %v76_v24 = vpop.permute.xlu0 %75  ;;  %8779 = vmatmul.mubr.msk.f32.vlgmr.msra.gmra.mrb[2].mxu0 %vm118_vm1, %v8777_v16  ;;  %264 = vmatprep.subr.mxu0 %v110_v22 }
  0x81   :  { %265 = vmatpush1.msra.mxu0 %v111_v25  ;;  %v94_v26 = vsel %vm89_vm2, %v76_v24, %v78_v23  ;;  %328 = vmatprep.mubr.f32.mxu0 %v9147_v4 }
  0x82   :  { %338 = vmatprep.subr.mxu0 %v94_v26 }
  0x84   :  { %v80_v27 = vpop.permute.xlu1 %79  ;;  %v86_v28 = vpop.permute.xlu0 %85  ;;  %8780 = vmatmul.mubr.msk.f32.vlgmr.msra.gmra.mrb[4].mxu0 %vm118_vm1, %v8777_v16 }
  0x85   :  { %v95_v29 = vsel %vm89_vm2, %v86_v28, %v76_v24  ;;  %402 = vmatprep.mubr.f32.mxu0 %v9147_v4  ;;  %v93_v34 = vsel %vm89_vm2, %v78_v23, %v80_v27 }
  0x86   :  { %339 = vmatpush1.msra.mxu0 %v95_v29 }
  0x88   :  { %v84_v31 = vpop.permute.xlu1 %83  ;;  %v82_v32 = vpop.permute.xlu0 %81  ;;  %8781 = vmatmul.mubr.msk.f32.vlgmr.msra.gmra.mrb[0].mxu0 %vm118_vm1, %v96_v30 }
  0x89   :  { %v92_v33 = vsel %vm89_vm2, %v80_v27, %v82_v32  ;;  %473 = vmatprep.mubr.f32.mxu0 %v9147_v4  ;;  %v90_v35 = vsel %vm89_vm2, %v84_v31, %v86_v28  ;;  %v91_v38 = vsel %vm89_vm2, %v82_v32, %v84_v31  ;;  %v8800_v28 = vld [vmem:[%s10465_s2 + $0x30] sm:$0xff] }
  0x8a   :  { %409 = vmatprep.subr.mxu0 %v92_v33 }
  0x8b   :  { %410 = vmatpush1.msra.mxu0 %v93_v34 }
  0x8c   :  { %v554_v36 = vpop.permute.xlu1 %553  ;;  %v552_v37 = vpop.permute.xlu0 %551  ;;  %8782 = vmatmul.mubr.msk.f32.vlgmr.msra.gmra.mrb[2].mxu0 %vm118_vm1, %v96_v30  ;;  %480 = vmatprep.subr.mxu0 %v90_v35 }
  0x8d   :  { %481 = vmatpush1.msra.mxu0 %v91_v38  ;;  %v568_v39 = vsel %vm563_vm3, %v552_v37, %v554_v36  ;;  %544 = vmatprep.mubr.f32.mxu0 %v9147_v4 }
  0x8e   :  { %575 = vmatprep.subr.mxu0 %v568_v39  ;;  %v8804_v39 = vld [vmem:[%s10465_s2 + $0x38] sm:$0xff] }
  0x90   :  { %v556_v40 = vpop.permute.xlu1 %555  ;;  %v562_v41 = vpop.permute.xlu0 %561  ;;  %8783 = vmatmul.mubr.msk.f32.vlgmr.msra.gmra.mrb[4].mxu0 %vm118_vm1, %v96_v30 }
  0x91   :  { %v569_v42 = vsel %vm563_vm3, %v562_v41, %v552_v37  ;;  %639 = vmatprep.mubr.f32.mxu0 %v9147_v4  ;;  %v567_v47 = vsel %vm563_vm3, %v554_v36, %v556_v40 }
  0x92   :  { %576 = vmatpush1.msra.mxu0 %v569_v42 }
  0x94   :  { %v560_v44 = vpop.permute.xlu1 %559  ;;  %v558_v45 = vpop.permute.xlu0 %557  ;;  %8785 = vmatmul.mubr.msk.f32.vlgmr.msra.gmra.mrb[0].mxu0 %vm118_vm1, %v8784_v43 }
  0x95   :  { %v566_v46 = vsel %vm563_vm3, %v556_v40, %v558_v45  ;;  %710 = vmatprep.mubr.f32.mxu0 %v9147_v4  ;;  %v564_v48 = vsel %vm563_vm3, %v560_v44, %v562_v41  ;;  %v565_v51 = vsel %vm563_vm3, %v558_v45, %v560_v44 }
  0x96   :  { %646 = vmatprep.subr.mxu0 %v566_v46 }
  0x97   :  { %647 = vmatpush1.msra.mxu0 %v567_v47 }
  0x98   :  { %v797_v49 = vpop.permute.xlu1 %796  ;;  %v795_v50 = vpop.permute.xlu0 %794  ;;  %8786 = vmatmul.mubr.msk.f32.vlgmr.msra.gmra.mrb[2].mxu0 %vm118_vm1, %v8784_v43  ;;  %717 = vmatprep.subr.mxu0 %v564_v48 }
  0x99   :  { %718 = vmatpush1.msra.mxu0 %v565_v51  ;;  %v811_v52 = vsel %vm806_vm4, %v795_v50, %v797_v49  ;;  %781 = vmatprep.mubr.f32.mxu0 %v9147_v4 }
  0x9a   :  { %818 = vmatprep.subr.mxu0 %v811_v52 }
  0x9c   :  { %v799_v53 = vpop.permute.xlu1 %798  ;;  %v805_v54 = vpop.permute.xlu0 %804  ;;  %8787 = vmatmul.mubr.msk.f32.vlgmr.msra.gmra.mrb[4].mxu0 %vm118_vm1, %v8784_v43 }
  0x9d   :  { %v812_v55 = vsel %vm806_vm4, %v805_v54, %v795_v50  ;;  %882 = vmatprep.mubr.f32.mxu0 %v9147_v4  ;;  %v810_v60 = vsel %vm806_vm4, %v797_v49, %v799_v53  ;;  %v8808_v50 = vld [vmem:[%s10465_s2 + $0x40] sm:$0xff] }
  0x9e   :  { %819 = vmatpush1.msra.mxu0 %v812_v55  ;;  %v39_v55 = vshrl.u32 %v38_v9, 7 }
  0xa0   :  { %v803_v57 = vpop.permute.xlu1 %802  ;;  %v801_v58 = vpop.permute.xlu0 %800  ;;  %8789 = vmatmul.mubr.msk.f32.vlgmr.msra.gmra.mrb[0].mxu0 %vm118_vm1, %v8788_v56 }
  0xa1   :  { %v809_v59 = vsel %vm806_vm4, %v799_v53, %v801_v58  ;;  %953 = vmatprep.mubr.f32.mxu0 %v9147_v4  ;;  %v807_v61 = vsel %vm806_vm4, %v803_v57, %v805_v54  ;;  %v808_v62 = vsel %vm806_vm4, %v801_v58, %v803_v57  ;;  %v36_v58 = vld [vmem:[%s10464_s1] sm:$0x3f] }
  0xa2   :  { %889 = vmatprep.subr.mxu0 %v809_v59 }
  0xa3   :  { %890 = vmatpush1.msra.mxu0 %v810_v60 }
  0xa4   :  { %8790 = vmatmul.mubr.msk.f32.vlgmr.msra.gmra.mrb[2].mxu0 %vm118_vm1, %v8788_v56  ;;  %960 = vmatprep.subr.mxu0 %v807_v61  ;;  %v1266_v63 = vpop.permute.xlu1 %1265  ;;  %v1264_v7 = vpop.permute.xlu0 %1263 }
  0xa5   :  { %961 = vmatpush1.msra.mxu0 %v808_v62  ;;  %1024 = vmatprep.mubr.f32.mxu0 %v9147_v4  ;;  %v44_v62 = vsub.s32 1, %v39_v55 }
  0xa6   :  { %1042 = vmatprep.subr.mxu0 %v9234_v3 }
  0xa7   :  { %v9546_v9 = vrot.slane %v36_v58, %v44_v62 }
  0xa8   :  { %8791 = vmatmul.mubr.msk.f32.vlgmr.msra.gmra.mrb[4].mxu0 %vm118_vm1, %v8788_v56  ;;  %v1268_v8 = vpop.permute.xlu1 %1267  ;;  %v1262_v11 = vpop.permute.xlu0 %1261  ;;  %v40_v56 = vsub.s32 0, %v39_v55 }
  0xa9   :  { %1043 = vmatpush1.msra.mxu0 %v9220_v1  ;;  %1106 = vmatprep.mubr.f32.mxu0 %v9147_v4  ;;  %v1277_v1 = vsel %vm1273_vm5, %v1264_v7, %v1266_v63  ;;  %v1276_v17 = vsel %vm1273_vm5, %v1266_v63, %v1268_v8 }
  0xaa   :  { %1113 = vmatprep.subr.mxu0 %v9250_v6  ;;  %v9541_v60 = vrot.slane %v36_v58, %v40_v56 }
  0xac   :  { %8793 = vmatmul.mubr.msk.f32.vlgmr.msra.gmra.mrb[0].mxu0 %vm118_vm1, %v8792_v12  ;;  %v1272_v13 = vpop.permute.xlu1 %1271  ;;  %v1270_v3 = vpop.permute.xlu0 %1269 }
  0xad   :  { %1114 = vmatpush1.msra.mxu0 %v9229_v2  ;;  %1177 = vmatprep.mubr.f32.mxu0 %v9147_v4  ;;  %v1275_v6 = vsel %vm1273_vm5, %v1268_v8, %v1270_v3  ;;  %v1279_v20 = vsel %vm1273_vm5, %v1272_v13, %v1262_v11  ;;  %v1274_v22 = vsel %vm1273_vm5, %v1270_v3, %v1272_v13 }
  0xae   :  { %1184 = vmatprep.subr.mxu0 %v9215_v0  ;;  %v1278_v0 = vsel %vm1273_vm5, %v1262_v11, %v1264_v7  ;;  %v48_v11 = vsub.s32 2, %v39_v55 }
  0xb0   :  { %8794 = vmatmul.mubr.msk.f32.vlgmr.msra.gmra.mrb[2].mxu0 %vm118_vm1, %v8792_v12  ;;  %v1509_v14 = vpop.permute.xlu1 %1508  ;;  %v1507_v15 = vpop.permute.xlu0 %1506 }
  0xb1   :  { %1185 = vmatpush1.msra.mxu0 %v9245_v5  ;;  %1248 = vmatprep.mubr.f32.mxu0 %v9147_v4  ;;  %v8796_v5 = vld [vmem:[%s10465_s2 + $0x28] sm:$0xff]  ;;  %v1520_v21 = vsel %vm1516_vm6, %v1507_v15, %v1509_v14 }
  0xb2   :  { %1285 = vmatprep.subr.mxu0 %v1277_v1 }
  0xb4   :  { %8795 = vmatmul.mubr.msk.f32.vlgmr.msra.gmra.mrb[4].mxu0 %vm118_vm1, %v8792_v12  ;;  %v1511_v2 = vpop.permute.xlu1 %1510  ;;  %v1505_v16 = vpop.permute.xlu0 %1504 }
  0xb5   :  { %1286 = vmatpush1.msra.mxu0 %v1278_v0  ;;  %1349 = vmatprep.mubr.f32.mxu0 %v9147_v4  ;;  %v1521_v26 = vsel %vm1516_vm6, %v1505_v16, %v1507_v15  ;;  %v1519_v30 = vsel %vm1516_vm6, %v1509_v14, %v1511_v2  ;;  %v60_v15 = vsub.s32 5, %v39_v55 }
  0xb6   :  { %1356 = vmatprep.subr.mxu0 %v1275_v6  ;;  %v9550_v6 = vrot.slane %v36_v58, %v48_v11  ;;  %v8819_v11 = vld [vmem:[%s10467_s4 + $0x10] sm:$0xff] }
  0xb8   :  { %8797 = vmatmul.mubr.msk.f32.vlgmr.msra.gmra.mrb[0].mxu0 %vm118_vm1, %v8796_v5  ;;  %v1515_v18 = vpop.permute.xlu1 %1514  ;;  %v1513_v19 = vpop.permute.xlu0 %1512 }
  0xb9   :  { %1357 = vmatpush1.msra.mxu0 %v1276_v17  ;;  %1420 = vmatprep.mubr.f32.mxu0 %v9147_v4  ;;  %v1518_v25 = vsel %vm1516_vm6, %v1511_v2, %v1513_v19  ;;  %v1522_v32 = vsel %vm1516_vm6, %v1515_v18, %v1505_v16  ;;  %v1517_v34 = vsel %vm1516_vm6, %v1513_v19, %v1515_v18  ;;  %v52_v19 = vsub.s32 3, %v39_v55 }
  0xba   :  { %1427 = vmatprep.subr.mxu0 %v1279_v20 }
  0xbc   :  { %8798 = vmatmul.mubr.msk.f32.vlgmr.msra.gmra.mrb[2].mxu0 %vm118_vm1, %v8796_v5  ;;  %v1752_v23 = vpop.permute.xlu1 %1751  ;;  %v1750_v24 = vpop.permute.xlu0 %1749 }
  0xbd   :  { %1428 = vmatpush1.msra.mxu0 %v1274_v22  ;;  %1491 = vmatprep.mubr.f32.mxu0 %v9147_v4  ;;  %v1763_v33 = vsel %vm1759_vm7, %v1750_v24, %v1752_v23 }
  0xbe   :  { %1528 = vmatprep.subr.mxu0 %v1520_v21  ;;  %v9555_v21 = vrot.slane %v36_v58, %v60_v15 }
  0xc0   :  { %8799 = vmatmul.mubr.msk.f32.vlgmr.msra.gmra.mrb[4].mxu0 %vm118_vm1, %v8796_v5  ;;  %v1748_v27 = vpop.permute.xlu0 %1747  ;;  %v1754_v29 = vpop.permute.xlu1 %1753  ;;  %v56_v5 = vsub.s32 4, %v39_v55 }
  0xc1   :  { %1529 = vmatpush1.msra.mxu0 %v1521_v26  ;;  %1592 = vmatprep.mubr.f32.mxu0 %v9147_v4  ;;  %v1764_v38 = vsel %vm1759_vm7, %v1748_v27, %v1750_v24  ;;  %v1762_v42 = vsel %vm1759_vm7, %v1752_v23, %v1754_v29 }
  0xc2   :  { %1599 = vmatprep.subr.mxu0 %v1518_v25  ;;  %v9562_v25 = vrot.slane %v36_v58, %v56_v5 }
  0xc4   :  { %8801 = vmatmul.mubr.msk.f32.vlgmr.msra.gmra.mrb[0].mxu0 %vm118_vm1, %v8800_v28  ;;  %v1756_v31 = vpop.permute.xlu0 %1755  ;;  %v1758_v35 = vpop.permute.xlu1 %1757 }
  0xc5   :  { %1600 = vmatpush1.msra.mxu0 %v1519_v30  ;;  %1663 = vmatprep.mubr.f32.mxu0 %v9147_v4  ;;  %v1761_v37 = vsel %vm1759_vm7, %v1754_v29, %v1756_v31  ;;  %v1765_v43 = vsel %vm1759_vm7, %v1758_v35, %v1748_v27  ;;  %v1760_v46 = vsel %vm1759_vm7, %v1756_v31, %v1758_v35 }
  0xc6   :  { %1670 = vmatprep.subr.mxu0 %v1522_v32  ;;  %v9564_v27 = vrot.slane %v36_v58, %v52_v19  ;;  %v2256_v32 = vld [vmem:[%s10468_s5] sm:$0xff] }
  0xc8   :  { %8802 = vmatmul.mubr.msk.f32.vlgmr.msra.gmra.mrb[2].mxu0 %vm118_vm1, %v8800_v28  ;;  %v1993_v36 = vpop.permute.xlu0 %1992  ;;  %v1995_v40 = vpop.permute.xlu1 %1994 }
  0xc9   :  { %1671 = vmatpush1.msra.mxu0 %v1517_v34  ;;  %1734 = vmatprep.mubr.f32.mxu0 %v9147_v4  ;;  %v2006_v44 = vsel %vm2002_vm8, %v1993_v36, %v1995_v40 }
  0xca   :  { %1771 = vmatprep.subr.mxu0 %v1763_v33 }
  0xcc   :  { %8803 = vmatmul.mubr.msk.f32.vlgmr.msra.gmra.mrb[4].mxu0 %vm118_vm1, %v8800_v28  ;;  %v1991_v41 = vpop.permute.xlu0 %1990  ;;  %v1997_v45 = vpop.permute.xlu1 %1996 }
  0xcd   :  { %1772 = vmatpush1.msra.mxu0 %v1764_v38  ;;  %1835 = vmatprep.mubr.f32.mxu0 %v9147_v4  ;;  %v2007_v49 = vsel %vm2002_vm8, %v1991_v41, %v1993_v36  ;;  %v2005_v52 = vsel %vm2002_vm8, %v1995_v40, %v1997_v45  ;;  %v8812_v38 = vld [vmem:[%s10467_s4 + $0x8] sm:$0xff] }
  0xce   :  { %1842 = vmatprep.subr.mxu0 %v1761_v37 }
  0xd0   :  { %8805 = vmatmul.mubr.msk.f32.vlgmr.msra.gmra.mrb[0].mxu0 %vm118_vm1, %v8804_v39  ;;  %v1999_v47 = vpop.permute.xlu0 %1998  ;;  %v2001_v51 = vpop.permute.xlu1 %2000 }
  0xd1   :  { %1843 = vmatpush1.msra.mxu0 %v1762_v42  ;;  %1906 = vmatprep.mubr.f32.mxu0 %v9147_v4  ;;  %v2004_v48 = vsel %vm2002_vm8, %v1997_v45, %v1999_v47  ;;  %v2008_v53 = vsel %vm2002_vm8, %v2001_v51, %v1991_v41  ;;  %v2003_v54 = vsel %vm2002_vm8, %v1999_v47, %v2001_v51 }
  0xd2   :  { %1913 = vmatprep.subr.mxu0 %v1765_v43 }
  0xd4   :  { %8806 = vmatmul.mubr.msk.f32.vlgmr.msra.gmra.mrb[2].mxu0 %vm118_vm1, %v8804_v39 }
  0xd5   :  { %1914 = vmatpush1.msra.mxu0 %v1760_v46  ;;  %1977 = vmatprep.mubr.f32.mxu0 %v9147_v4 }
  0xd6   :  { %2014 = vmatprep.subr.mxu0 %v2006_v44 }
  0xd8   :  { %8807 = vmatmul.mubr.msk.f32.vlgmr.msra.gmra.mrb[4].mxu0 %vm118_vm1, %v8804_v39 }
  0xd9   :  { %2015 = vmatpush1.msra.mxu0 %v2007_v49  ;;  %2078 = vmatprep.mubr.f32.mxu0 %v9147_v4 }
  0xda   :  { %2085 = vmatprep.subr.mxu0 %v2004_v48 }
  0xdc   :  { %8809 = vmatmul.mubr.msk.f32.vlgmr.msra.gmra.mrb[0].mxu0 %vm118_vm1, %v8808_v50 }
  0xdd   :  { %2086 = vmatpush1.msra.mxu0 %v2005_v52  ;;  %2149 = vmatprep.mubr.f32.mxu0 %v9147_v4  ;;  %v2275_v52 = vld [vmem:[%s10467_s4] sm:$0xff] }
  0xde   :  { %2156 = vmatprep.subr.mxu0 %v2008_v53 }
  0xe0   :  { %8810 = vmatmul.mubr.msk.f32.vlgmr.msra.gmra.mrb[2].mxu0 %vm118_vm1, %v8808_v50 }
  0xe1   :  { %2157 = vmatpush1.msra.mxu0 %v2003_v54  ;;  %2220 = vmatprep.mubr.f32.mxu0 %v9147_v4  ;;  %v2236_v57 = vpop.permute.xlu0 %2235 }
  0xe4   :  { %8811 = vmatmul.mubr.msk.f32.vlgmr.msra.gmra.mrb[4].mxu0 %vm118_vm1, %v8808_v50 }
  0xe5   :  { %4534 = vmatprep.mubr.f32.mxu0 %v9147_v4 }
 0x1af   :  { %v2080_v59 = vpop.f32.mrb[0].mxu0 }
 0x1b0   :  { %v2238_v61 = vadd.f32 %v2236_v57, %v2080_v59  ;;  %v2082_v63 = vpop.f32.mrb[1].mxu0 }
 0x1b1   :  { %v2239_v7 = vadd.f32 %v2236_v57, %v2082_v63 }
 0x1b2   :  { %v2244_v8 = vmax.f32 %v2238_v61, 0.0 }
 0x1b3   :  { %v2151_v12 = vpop.f32.mrb[2].mxu0  ;;  %v2245_v3 = vmax.f32 %v2239_v7, 0.0 }
 0x1b4   :  { %v9544_v13 = vmul.f32 %v2244_v8, %v9541_v60  ;;  %v2240_v1 = vadd.f32 %v2236_v57, %v2151_v12  ;;  %v2153_v14 = vpop.f32.mrb[3].mxu0 }
 0x1b5   :  { %v9553_v2 = vmul.f32 %v2245_v3, %v9546_v9  ;;  %v2241_v20 = vadd.f32 %v2236_v57, %v2153_v14 }
 0x1b6   :  { %2276 = vrot.lane.b32.xlu1 %v9544_v13, %s9146_s17  ;;  %v2246_v16 = vmax.f32 %v2240_v1, 0.0 }
 0x1b7   :  { %v2222_v0 = vpop.f32.mrb[4].mxu0  ;;  %v2247_v28 = vmax.f32 %v2241_v20, 0.0 }
 0x1b8   :  { %v2242_v17 = vadd.f32 %v2236_v57, %v2222_v0  ;;  %v2224_v18 = vpop.f32.mrb[5].mxu0  ;;  %v9560_v24 = vmul.f32 %v2246_v16, %v9550_v6 }
 0x1b9   :  { %v2243_v22 = vadd.f32 %v2236_v57, %v2224_v18  ;;  %v9577_v31 = vmul.f32 %v2247_v28, %v9564_v27 }
 0x1ba   :  { %2278 = vrot.lane.b32.xlu1 %v9553_v2, %s9146_s17  ;;  %v2248_v26 = vmax.f32 %v2242_v17, 0.0 }
 0x1bb   :  { %v2249_v23 = vmax.f32 %v2243_v22, 0.0  ;;  %v8823_v22 = vld [vmem:[%s10467_s4 + $0x18] sm:$0xff] }
 0x1bc   :  { %v9574_v30 = vmul.f32 %v2248_v26, %v9562_v25 }
 0x1bd   :  { %v9567_v29 = vmul.f32 %v2249_v23, %v9555_v21 }
 0x1be   :  { %2280 = vrot.lane.b32.xlu1 %v9560_v24, %s9146_s17 }
 0x1bf   :  { %2286 = vrot.lane.b32.xlu0 %v9567_v29, %s9146_s17 }
 0x1c2   :  { %2284 = vrot.lane.b32.xlu1 %v9574_v30, %s9146_s17 }
 0x1c3   :  { %2282 = vrot.lane.b32.xlu0 %v9577_v31, %s9146_s17 }
 0x1c6   :  { %2259 = vrot.lane.b32.xlu1 %v9553_v2, %s9148_s26 }
 0x1c7   :  { %2257 = vrot.lane.b32.xlu0 %v9544_v13, %s9148_s26 }
 0x1ca   :  { %2261 = vrot.lane.b32.xlu1 %v9560_v24, %s9148_s26 }
 0x1cb   :  { %2267 = vrot.lane.b32.xlu0 %v9567_v29, %s9148_s26 }
 0x1ce   :  { %2265 = vrot.lane.b32.xlu1 %v9574_v30, %s9148_s26 }
 0x1cf   :  { %2263 = vrot.lane.b32.xlu0 %v9577_v31, %s9148_s26 }
 0x1d2   :  { %2730 = vrot.lane.b32.xlu1 %v9553_v2, %s9149_s0 }
 0x1d3   :  { %2728 = vrot.lane.b32.xlu0 %v9544_v13, %s9149_s0 }
 0x1d6   :  { %2732 = vrot.lane.b32.xlu1 %v9560_v24, %s9149_s0 }
 0x1d7   :  { %2738 = vrot.lane.b32.xlu0 %v9567_v29, %s9149_s0 }
 0x1da   :  { %2736 = vrot.lane.b32.xlu1 %v9574_v30, %s9149_s0 }
 0x1db   :  { %2734 = vrot.lane.b32.xlu0 %v9577_v31, %s9149_s0 }
 0x1de   :  { %2972 = vrot.lane.b32.xlu1 %v9553_v2, %s9150_s27 }
 0x1df   :  { %2970 = vrot.lane.b32.xlu0 %v9544_v13, %s9150_s27 }
 0x1e2   :  { %2974 = vrot.lane.b32.xlu1 %v9560_v24, %s9150_s27 }
 0x1e3   :  { %2980 = vrot.lane.b32.xlu0 %v9567_v29, %s9150_s27 }
 0x1e6   :  { %2978 = vrot.lane.b32.xlu1 %v9574_v30, %s9150_s27 }
 0x1e7   :  { %2976 = vrot.lane.b32.xlu0 %v9577_v31, %s9150_s27 }
 0x1ea   :  { %3440 = vrot.lane.b32.xlu1 %v9560_v24, %s9151_s28 }
 0x1eb   :  { %3438 = vrot.lane.b32.xlu0 %v9553_v2, %s9151_s28 }
 0x1ee   :  { %3442 = vrot.lane.b32.xlu1 %v9577_v31, %s9151_s28 }
 0x1ef   :  { %3436 = vrot.lane.b32.xlu0 %v9544_v13, %s9151_s28 }
 0x1f2   :  { %3446 = vrot.lane.b32.xlu1 %v9567_v29, %s9151_s28 }
 0x1f3   :  { %3444 = vrot.lane.b32.xlu0 %v9574_v30, %s9151_s28 }
 0x1f6   :  { %3682 = vrot.lane.b32.xlu1 %v9560_v24, %s9152_s29 }
 0x1f7   :  { %3680 = vrot.lane.b32.xlu0 %v9553_v2, %s9152_s29 }
 0x1fa   :  { %3684 = vrot.lane.b32.xlu1 %v9577_v31, %s9152_s29 }
 0x1fb   :  { %3678 = vrot.lane.b32.xlu0 %v9544_v13, %s9152_s29 }
 0x1fe   :  { %3688 = vrot.lane.b32.xlu1 %v9567_v29, %s9152_s29 }
 0x1ff   :  { %3686 = vrot.lane.b32.xlu0 %v9574_v30, %s9152_s29 }
 0x202   :  { %3924 = vrot.lane.b32.xlu1 %v9560_v24, %s9153_s30 }
 0x203   :  { %3922 = vrot.lane.b32.xlu0 %v9553_v2, %s9153_s30 }
 0x206   :  { %3926 = vrot.lane.b32.xlu1 %v9577_v31, %s9153_s30 }
 0x207   :  { %3920 = vrot.lane.b32.xlu0 %v9544_v13, %s9153_s30 }
 0x20a   :  { %3930 = vrot.lane.b32.xlu1 %v9567_v29, %s9153_s30 }
 0x20b   :  { %3928 = vrot.lane.b32.xlu0 %v9574_v30, %s9153_s30 }
 0x20e   :  { %4166 = vrot.lane.b32.xlu1 %v9560_v24, %s9154_s11 }
 0x20f   :  { %4164 = vrot.lane.b32.xlu0 %v9553_v2, %s9154_s11 }
 0x212   :  { %4168 = vrot.lane.b32.xlu1 %v9577_v31, %s9154_s11 }
 0x213   :  { %4162 = vrot.lane.b32.xlu0 %v9544_v13, %s9154_s11 }
 0x216   :  { %4172 = vrot.lane.b32.xlu1 %v9567_v29, %s9154_s11 }
 0x217   :  { %4170 = vrot.lane.b32.xlu0 %v9574_v30, %s9154_s11 }
 0x21b   :  { %4406 = vperm.xlu0 %9120, %v2256_v32  }
 0x228   :  { %v2277_v33 = vpop.permute.xlu1 %2276 }
 0x22c   :  { %v2279_v34 = vpop.permute.xlu1 %2278 }
 0x22d   :  { %v2292_v35 = vsel %vm109_vm0, %v2277_v33, %v2279_v34 }
 0x22e   :  { %2299 = vmatprep.subr.mxu1 %v2292_v35 }
 0x230   :  { %v2281_v36 = vpop.permute.xlu1 %2280 }
 0x231   :  { %v2287_v37 = vpop.permute.xlu0 %2286  ;;  %v2291_v43 = vsel %vm109_vm0, %v2279_v34, %v2281_v36 }
 0x232   :  { %v2293_v39 = vsel %vm109_vm0, %v2287_v37, %v2277_v33 }
 0x233   :  { %2300 = vmatpush1.msra.mxu1 %v2293_v39  ;;  %v8827_v39 = vld [vmem:[%s10467_s4 + $0x20] sm:$0xff] }
 0x234   :  { %v2285_v40 = vpop.permute.xlu1 %2284  ;;  %8813 = vmatmul.mubr.msk.f32.vlgmr.msra.gmra.mrb[0].mxu1 %vm118_vm1, %v8812_v38 }
 0x235   :  { %v2283_v41 = vpop.permute.xlu0 %2282  ;;  %2434 = vmatprep.mubr.f32.mxu1 %v9147_v4  ;;  %v2288_v45 = vsel %vm109_vm0, %v2285_v40, %v2287_v37 }
 0x236   :  { %v2290_v42 = vsel %vm109_vm0, %v2281_v36, %v2283_v41  ;;  %v2289_v47 = vsel %vm109_vm0, %v2283_v41, %v2285_v40 }
 0x237   :  { %2370 = vmatprep.subr.mxu1 %v2290_v42 }
 0x238   :  { %2371 = vmatpush1.msra.mxu1 %v2291_v43  ;;  %v2260_v44 = vpop.permute.xlu1 %2259 }
 0x239   :  { %v2258_v46 = vpop.permute.xlu0 %2257  ;;  %8814 = vmatmul.mubr.msk.f32.vlgmr.msra.gmra.mrb[2].mxu1 %vm118_vm1, %v8812_v38  ;;  %2441 = vmatprep.subr.mxu1 %v2288_v45 }
 0x23a   :  { %2442 = vmatpush1.msra.mxu1 %v2289_v47  ;;  %v2273_v48 = vsel %vm89_vm2, %v2258_v46, %v2260_v44  ;;  %2505 = vmatprep.mubr.f32.mxu1 %v9147_v4 }
 0x23b   :  { %2515 = vmatprep.subr.mxu1 %v2273_v48 }
 0x23c   :  { %v2262_v49 = vpop.permute.xlu1 %2261 }
 0x23d   :  { %v2268_v50 = vpop.permute.xlu0 %2267  ;;  %8815 = vmatmul.mubr.msk.f32.vlgmr.msra.gmra.mrb[4].mxu1 %vm118_vm1, %v8812_v38  ;;  %v2272_v56 = vsel %vm89_vm2, %v2260_v44, %v2262_v49 }
 0x23e   :  { %v2274_v51 = vsel %vm89_vm2, %v2268_v50, %v2258_v46  ;;  %2579 = vmatprep.mubr.f32.mxu1 %v9147_v4 }
 0x23f   :  { %2516 = vmatpush1.msra.mxu1 %v2274_v51 }
 0x240   :  { %v2266_v53 = vpop.permute.xlu1 %2265 }
 0x241   :  { %v2264_v54 = vpop.permute.xlu0 %2263  ;;  %8816 = vmatmul.mubr.msk.f32.vlgmr.msra.gmra.mrb[0].mxu1 %vm118_vm1, %v2275_v52  ;;  %v2269_v58 = vsel %vm89_vm2, %v2266_v53, %v2268_v50 }
 0x242   :  { %v2271_v55 = vsel %vm89_vm2, %v2262_v49, %v2264_v54  ;;  %2650 = vmatprep.mubr.f32.mxu1 %v9147_v4  ;;  %v2270_v61 = vsel %vm89_vm2, %v2264_v54, %v2266_v53 }
 0x243   :  { %2586 = vmatprep.subr.mxu1 %v2271_v55  ;;  %v8835_v55 = vld [vmem:[%s10467_s4 + $0x30] sm:$0xff] }
 0x244   :  { %2587 = vmatpush1.msra.mxu1 %v2272_v56  ;;  %v2731_v57 = vpop.permute.xlu1 %2730 }
 0x245   :  { %v2729_v59 = vpop.permute.xlu0 %2728  ;;  %8817 = vmatmul.mubr.msk.f32.vlgmr.msra.gmra.mrb[2].mxu1 %vm118_vm1, %v2275_v52  ;;  %2657 = vmatprep.subr.mxu1 %v2269_v58 }
 0x246   :  { %2658 = vmatpush1.msra.mxu1 %v2270_v61  ;;  %v2744_v62 = vsel %vm563_vm3, %v2729_v59, %v2731_v57  ;;  %2721 = vmatprep.mubr.f32.mxu1 %v9147_v4 }
 0x247   :  { %2751 = vmatprep.subr.mxu1 %v2744_v62 }
 0x248   :  { %v2733_v63 = vpop.permute.xlu1 %2732 }
 0x249   :  { %v2739_v7 = vpop.permute.xlu0 %2738  ;;  %8818 = vmatmul.mubr.msk.f32.vlgmr.msra.gmra.mrb[4].mxu1 %vm118_vm1, %v2275_v52  ;;  %v2743_v14 = vsel %vm563_vm3, %v2731_v57, %v2733_v63 }
 0x24a   :  { %v2745_v8 = vsel %vm563_vm3, %v2739_v7, %v2729_v59  ;;  %2815 = vmatprep.mubr.f32.mxu1 %v9147_v4 }
 0x24b   :  { %2752 = vmatpush1.msra.mxu1 %v2745_v8 }
 0x24c   :  { %v2737_v12 = vpop.permute.xlu1 %2736 }
 0x24d   :  { %v2735_v3 = vpop.permute.xlu0 %2734  ;;  %8820 = vmatmul.mubr.msk.f32.vlgmr.msra.gmra.mrb[0].mxu1 %vm118_vm1, %v8819_v11  ;;  %v2740_v0 = vsel %vm563_vm3, %v2737_v12, %v2739_v7 }
 0x24e   :  { %v2742_v1 = vsel %vm563_vm3, %v2733_v63, %v2735_v3  ;;  %2886 = vmatprep.mubr.f32.mxu1 %v9147_v4  ;;  %v2741_v5 = vsel %vm563_vm3, %v2735_v3, %v2737_v12  ;;  %v8839_v12 = vld [vmem:[%s10467_s4 + $0x38] sm:$0xff] }
 0x24f   :  { %2822 = vmatprep.subr.mxu1 %v2742_v1 }
 0x250   :  { %2823 = vmatpush1.msra.mxu1 %v2743_v14  ;;  %v2973_v15 = vpop.permute.xlu1 %2972 }
 0x251   :  { %v2971_v16 = vpop.permute.xlu0 %2970  ;;  %8821 = vmatmul.mubr.msk.f32.vlgmr.msra.gmra.mrb[2].mxu1 %vm118_vm1, %v8819_v11  ;;  %2893 = vmatprep.subr.mxu1 %v2740_v0 }
 0x252   :  { %2894 = vmatpush1.msra.mxu1 %v2741_v5  ;;  %v2986_v17 = vsel %vm806_vm4, %v2971_v16, %v2973_v15  ;;  %2957 = vmatprep.mubr.f32.mxu1 %v9147_v4 }
 0x253   :  { %2993 = vmatprep.subr.mxu1 %v2986_v17 }
 0x254   :  { %v2975_v18 = vpop.permute.xlu1 %2974 }
 0x255   :  { %v2981_v19 = vpop.permute.xlu0 %2980  ;;  %8822 = vmatmul.mubr.msk.f32.vlgmr.msra.gmra.mrb[4].mxu1 %vm118_vm1, %v8819_v11  ;;  %v2985_v32 = vsel %vm806_vm4, %v2973_v15, %v2975_v18 }
 0x256   :  { %v2987_v20 = vsel %vm806_vm4, %v2981_v19, %v2971_v16  ;;  %3057 = vmatprep.mubr.f32.mxu1 %v9147_v4 }
 0x257   :  { %2994 = vmatpush1.msra.mxu1 %v2987_v20  ;;  %v8843_v20 = vld [vmem:[%s10467_s4 + $0x40] sm:$0xff] }
 0x258   :  { %v2979_v23 = vpop.permute.xlu1 %2978 }
 0x259   :  { %v2977_v26 = vpop.permute.xlu0 %2976  ;;  %8824 = vmatmul.mubr.msk.f32.vlgmr.msra.gmra.mrb[0].mxu1 %vm118_vm1, %v8823_v22  ;;  %v2982_v34 = vsel %vm806_vm4, %v2979_v23, %v2981_v19 }
 0x25a   :  { %v2984_v28 = vsel %vm806_vm4, %v2975_v18, %v2977_v26  ;;  %3128 = vmatprep.mubr.f32.mxu1 %v9147_v4  ;;  %v2983_v36 = vsel %vm806_vm4, %v2977_v26, %v2979_v23 }
 0x25b   :  { %3064 = vmatprep.subr.mxu1 %v2984_v28 }
 0x25c   :  { %3065 = vmatpush1.msra.mxu1 %v2985_v32  ;;  %v3441_v33 = vpop.permute.xlu1 %3440 }
 0x25d   :  { %v3439_v35 = vpop.permute.xlu0 %3438  ;;  %8825 = vmatmul.mubr.msk.f32.vlgmr.msra.gmra.mrb[2].mxu1 %vm118_vm1, %v8823_v22  ;;  %3135 = vmatprep.subr.mxu1 %v2982_v34 }
 0x25e   :  { %3136 = vmatpush1.msra.mxu1 %v2983_v36  ;;  %3199 = vmatprep.mubr.f32.mxu1 %v9147_v4  ;;  %v3451_v42 = vsel %vm1273_vm5, %v3439_v35, %v3441_v33 }
 0x25f   :  { %3217 = vmatprep.subr.mxu1 %v9553_v2 }
 0x260   :  { %v3443_v37 = vpop.permute.xlu1 %3442 }
 0x261   :  { %v3437_v38 = vpop.permute.xlu0 %3436  ;;  %8826 = vmatmul.mubr.msk.f32.vlgmr.msra.gmra.mrb[4].mxu1 %vm118_vm1, %v8823_v22  ;;  %v3450_v46 = vsel %vm1273_vm5, %v3441_v33, %v3443_v37 }
 0x262   :  { %3218 = vmatpush1.msra.mxu1 %v9544_v13  ;;  %3281 = vmatprep.mubr.f32.mxu1 %v9147_v4 }
 0x263   :  { %3288 = vmatprep.subr.mxu1 %v9577_v31 }
 0x264   :  { %v3447_v40 = vpop.permute.xlu1 %3446 }
 0x265   :  { %v3445_v41 = vpop.permute.xlu0 %3444  ;;  %8828 = vmatmul.mubr.msk.f32.vlgmr.msra.gmra.mrb[0].mxu1 %vm118_vm1, %v8827_v39  ;;  %v3453_v47 = vsel %vm1273_vm5, %v3447_v40, %v3437_v38 }
 0x266   :  { %3289 = vmatpush1.msra.mxu1 %v9560_v24  ;;  %3352 = vmatprep.mubr.f32.mxu1 %v9147_v4  ;;  %v3452_v24 = vsel %vm1273_vm5, %v3437_v38, %v3439_v35  ;;  %v3448_v50 = vsel %vm1273_vm5, %v3445_v41, %v3447_v40 }
 0x267   :  { %3359 = vmatprep.subr.mxu1 %v9567_v29  ;;  %v3449_v29 = vsel %vm1273_vm5, %v3443_v37, %v3445_v41 }
 0x268   :  { %v3683_v2 = vpop.permute.xlu1 %3682 }
 0x269   :  { %v3681_v13 = vpop.permute.xlu0 %3680  ;;  %8829 = vmatmul.mubr.msk.f32.vlgmr.msra.gmra.mrb[2].mxu1 %vm118_vm1, %v8827_v39 }
 0x26a   :  { %3360 = vmatpush1.msra.mxu1 %v9574_v30  ;;  %3423 = vmatprep.mubr.f32.mxu1 %v9147_v4  ;;  %v8831_v30 = vld [vmem:[%s10467_s4 + $0x28] sm:$0xff]  ;;  %v3693_v51 = vsel %vm1516_vm6, %v3681_v13, %v3683_v2 }
 0x26b   :  { %3459 = vmatprep.subr.mxu1 %v3451_v42 }
 0x26c   :  { %v3685_v31 = vpop.permute.xlu1 %3684 }
 0x26d   :  { %v3679_v43 = vpop.permute.xlu0 %3678  ;;  %8830 = vmatmul.mubr.msk.f32.vlgmr.msra.gmra.mrb[4].mxu1 %vm118_vm1, %v8827_v39  ;;  %v3692_v58 = vsel %vm1516_vm6, %v3683_v2, %v3685_v31 }
 0x26e   :  { %3460 = vmatpush1.msra.mxu1 %v3452_v24  ;;  %3523 = vmatprep.mubr.f32.mxu1 %v9147_v4  ;;  %v3694_v53 = vsel %vm1516_vm6, %v3679_v43, %v3681_v13 }
 0x26f   :  { %3530 = vmatprep.subr.mxu1 %v3449_v29 }
 0x270   :  { %v3689_v44 = vpop.permute.xlu1 %3688 }
 0x271   :  { %v3687_v45 = vpop.permute.xlu0 %3686  ;;  %8832 = vmatmul.mubr.msk.f32.vlgmr.msra.gmra.mrb[0].mxu1 %vm118_vm1, %v8831_v30  ;;  %v3695_v59 = vsel %vm1516_vm6, %v3689_v44, %v3679_v43 }
 0x272   :  { %3531 = vmatpush1.msra.mxu1 %v3450_v46  ;;  %3594 = vmatprep.mubr.f32.mxu1 %v9147_v4  ;;  %v3691_v54 = vsel %vm1516_vm6, %v3685_v31, %v3687_v45  ;;  %v3690_v62 = vsel %vm1516_vm6, %v3687_v45, %v3689_v44 }
 0x273   :  { %3601 = vmatprep.subr.mxu1 %v3453_v47 }
 0x274   :  { %v3925_v48 = vpop.permute.xlu1 %3924 }
 0x275   :  { %v3923_v49 = vpop.permute.xlu0 %3922  ;;  %8833 = vmatmul.mubr.msk.f32.vlgmr.msra.gmra.mrb[2].mxu1 %vm118_vm1, %v8831_v30 }
 0x276   :  { %3602 = vmatpush1.msra.mxu1 %v3448_v50  ;;  %3665 = vmatprep.mubr.f32.mxu1 %v9147_v4  ;;  %v3935_v63 = vsel %vm1759_vm7, %v3923_v49, %v3925_v48 }
 0x277   :  { %3701 = vmatprep.subr.mxu1 %v3693_v51  ;;  %v4427_v51 = vld [vmem:[%s10470_s7] sm:$0xff] }
 0x278   :  { %v3927_v56 = vpop.permute.xlu1 %3926 }
 0x279   :  { %v3921_v52 = vpop.permute.xlu0 %3920  ;;  %8834 = vmatmul.mubr.msk.f32.vlgmr.msra.gmra.mrb[4].mxu1 %vm118_vm1, %v8831_v30  ;;  %v3934_v14 = vsel %vm1759_vm7, %v3925_v48, %v3927_v56 }
 0x27a   :  { %3702 = vmatpush1.msra.mxu1 %v3694_v53  ;;  %3765 = vmatprep.mubr.f32.mxu1 %v9147_v4  ;;  %v3936_v8 = vsel %vm1759_vm7, %v3921_v52, %v3923_v49 }
 0x27b   :  { %3772 = vmatprep.subr.mxu1 %v3691_v54 }
 0x27c   :  { %v3931_v61 = vpop.permute.xlu1 %3930 }
 0x27d   :  { %v3929_v57 = vpop.permute.xlu0 %3928  ;;  %8836 = vmatmul.mubr.msk.f32.vlgmr.msra.gmra.mrb[0].mxu1 %vm118_vm1, %v8835_v55  ;;  %v3937_v15 = vsel %vm1759_vm7, %v3931_v61, %v3921_v52 }
 0x27e   :  { %3773 = vmatpush1.msra.mxu1 %v3692_v58  ;;  %3836 = vmatprep.mubr.f32.mxu1 %v9147_v4  ;;  %v3933_v11 = vsel %vm1759_vm7, %v3927_v56, %v3929_v57  ;;  %v3932_v16 = vsel %vm1759_vm7, %v3929_v57, %v3931_v61  ;;  %v8847_v58 = vld [vmem:[%s10469_s6 + $0x8] sm:$0xff] }
 0x27f   :  { %3843 = vmatprep.subr.mxu1 %v3695_v59 }
 0x280   :  { %v4167_v3 = vpop.permute.xlu1 %4166 }
 0x281   :  { %8837 = vmatmul.mubr.msk.f32.vlgmr.msra.gmra.mrb[2].mxu1 %vm118_vm1, %v8835_v55  ;;  %v4165_v7 = vpop.permute.xlu0 %4164 }
 0x282   :  { %3844 = vmatpush1.msra.mxu1 %v3690_v62  ;;  %3907 = vmatprep.mubr.f32.mxu1 %v9147_v4  ;;  %v4177_v5 = vsel %vm2002_vm8, %v4165_v7, %v4167_v3 }
 0x283   :  { %3943 = vmatprep.subr.mxu1 %v3935_v63 }
 0x284   :  { %v4169_v0 = vpop.permute.xlu1 %4168 }
 0x285   :  { %8838 = vmatmul.mubr.msk.f32.vlgmr.msra.gmra.mrb[4].mxu1 %vm118_vm1, %v8835_v55  ;;  %v4163_v1 = vpop.permute.xlu0 %4162  ;;  %v4176_v23 = vsel %vm2002_vm8, %v4167_v3, %v4169_v0 }
 0x286   :  { %3944 = vmatpush1.msra.mxu1 %v3936_v8  ;;  %4007 = vmatprep.mubr.f32.mxu1 %v9147_v4  ;;  %v4178_v18 = vsel %vm2002_vm8, %v4163_v1, %v4165_v7 }
 0x287   :  { %4014 = vmatprep.subr.mxu1 %v3933_v11 }
 0x288   :  { %v4173_v22 = vpop.permute.xlu1 %4172 }
 0x289   :  { %8840 = vmatmul.mubr.msk.f32.vlgmr.msra.gmra.mrb[0].mxu1 %vm118_vm1, %v8839_v12  ;;  %v4171_v17 = vpop.permute.xlu0 %4170  ;;  %v4179_v26 = vsel %vm2002_vm8, %v4173_v22, %v4163_v1 }
 0x28a   :  { %4015 = vmatpush1.msra.mxu1 %v3934_v14  ;;  %4078 = vmatprep.mubr.f32.mxu1 %v9147_v4  ;;  %v4175_v19 = vsel %vm2002_vm8, %v4169_v0, %v4171_v17  ;;  %v4174_v28 = vsel %vm2002_vm8, %v4171_v17, %v4173_v22 }
 0x28b   :  { %4085 = vmatprep.subr.mxu1 %v3937_v15 }
 0x28d   :  { %8841 = vmatmul.mubr.msk.f32.vlgmr.msra.gmra.mrb[2].mxu1 %vm118_vm1, %v8839_v12 }
 0x28e   :  { %4086 = vmatpush1.msra.mxu1 %v3932_v16  ;;  %4149 = vmatprep.mubr.f32.mxu1 %v9147_v4  ;;  %v4446_v16 = vld [vmem:[%s10469_s6] sm:$0xff] }
 0x28f   :  { %4185 = vmatprep.subr.mxu1 %v4177_v5 }
 0x291   :  { %8842 = vmatmul.mubr.msk.f32.vlgmr.msra.gmra.mrb[4].mxu1 %vm118_vm1, %v8839_v12 }
 0x292   :  { %4186 = vmatpush1.msra.mxu1 %v4178_v18  ;;  %4249 = vmatprep.mubr.f32.mxu1 %v9147_v4 }
 0x293   :  { %4256 = vmatprep.subr.mxu1 %v4175_v19 }
 0x295   :  { %8844 = vmatmul.mubr.msk.f32.vlgmr.msra.gmra.mrb[0].mxu1 %vm118_vm1, %v8843_v20 }
 0x296   :  { %4257 = vmatpush1.msra.mxu1 %v4176_v23  ;;  %4320 = vmatprep.mubr.f32.mxu1 %v9147_v4 }
 0x297   :  { %4327 = vmatprep.subr.mxu1 %v4179_v26 }
 0x299   :  { %8845 = vmatmul.mubr.msk.f32.vlgmr.msra.gmra.mrb[2].mxu1 %vm118_vm1, %v8843_v20 }
 0x29a   :  { %4328 = vmatpush1.msra.mxu1 %v4174_v28  ;;  %4391 = vmatprep.mubr.f32.mxu1 %v9147_v4  ;;  %v4407_v32 = vpop.permute.xlu0 %4406 }
 0x29d   :  { %8846 = vmatmul.mubr.msk.f32.vlgmr.msra.gmra.mrb[4].mxu1 %vm118_vm1, %v8843_v20 }
 0x29e   :  { %6705 = vmatprep.mubr.f32.mxu1 %v9147_v4 }
 0x368   :  { %v4251_v33 = vpop.f32.mrb[0].mxu1 }
 0x369   :  { %v4409_v34 = vadd.f32 %v4407_v32, %v4251_v33  ;;  %v4253_v35 = vpop.f32.mrb[1].mxu1 }
 0x36a   :  { %v4410_v36 = vadd.f32 %v4407_v32, %v4253_v35  ;;  %v8854_v35 = vld [vmem:[%s10469_s6 + $0x10] sm:$0xff] }
 0x36b   :  { %v4415_v37 = vmax.f32 %v4409_v34, 0.0 }
 0x36c   :  { %v4416_v38 = vmax.f32 %v4410_v36, 0.0  ;;  %v4322_v39 = vpop.f32.mrb[2].mxu1 }
 0x36d   :  { %v9854_v40 = vmul.f32 %v4415_v37, %v9541_v60  ;;  %v4411_v41 = vadd.f32 %v4407_v32, %v4322_v39  ;;  %v4324_v2 = vpop.f32.mrb[3].mxu1 }
 0x36e   :  { %v9857_v13 = vmul.f32 %v4416_v38, %v9546_v9  ;;  %v4412_v30 = vadd.f32 %v4407_v32, %v4324_v2 }
 0x36f   :  { %v4417_v42 = vmax.f32 %v4411_v41, 0.0  ;;  %4447 = vrot.lane.b32.xlu1 %v9854_v40, %s9146_s17 }
 0x370   :  { %4449 = vrot.lane.b32.xlu0 %v9857_v13, %s9146_s17  ;;  %v4393_v31 = vpop.f32.mrb[4].mxu1  ;;  %v4418_v48 = vmax.f32 %v4412_v30, 0.0 }
 0x371   :  { %v9864_v43 = vmul.f32 %v4417_v42, %v9550_v6  ;;  %v4413_v24 = vadd.f32 %v4407_v32, %v4393_v31  ;;  %v4395_v29 = vpop.f32.mrb[5].mxu1 }
 0x372   :  { %v4414_v44 = vadd.f32 %v4407_v32, %v4395_v29  ;;  %v9879_v50 = vmul.f32 %v4418_v48, %v9564_v27 }
 0x373   :  { %v4419_v45 = vmax.f32 %v4413_v24, 0.0 }
 0x374   :  { %v4420_v46 = vmax.f32 %v4414_v44, 0.0  ;;  %4451 = vrot.lane.b32.xlu0 %v9864_v43, %s9146_s17 }
 0x375   :  { %v9869_v47 = vmul.f32 %v4419_v45, %v9562_v25  ;;  %v8858_v45 = vld [vmem:[%s10469_s6 + $0x18] sm:$0xff] }
 0x376   :  { %v9872_v49 = vmul.f32 %v4420_v46, %v9555_v21 }
 0x378   :  { %4455 = vrot.lane.b32.xlu0 %v9869_v47, %s9146_s17  ;;  %4457 = vrot.lane.b32.xlu1 %v9872_v49, %s9146_s17 }
 0x37c   :  { %4430 = vrot.lane.b32.xlu0 %v9857_v13, %s9148_s26  ;;  %4453 = vrot.lane.b32.xlu1 %v9879_v50, %s9146_s17 }
 0x380   :  { %4432 = vrot.lane.b32.xlu0 %v9864_v43, %s9148_s26  ;;  %4428 = vrot.lane.b32.xlu1 %v9854_v40, %s9148_s26 }
 0x384   :  { %4436 = vrot.lane.b32.xlu0 %v9869_v47, %s9148_s26  ;;  %4438 = vrot.lane.b32.xlu1 %v9872_v49, %s9148_s26 }
 0x388   :  { %4901 = vrot.lane.b32.xlu0 %v9857_v13, %s9149_s0  ;;  %4434 = vrot.lane.b32.xlu1 %v9879_v50, %s9148_s26 }
 0x38c   :  { %4903 = vrot.lane.b32.xlu0 %v9864_v43, %s9149_s0  ;;  %4899 = vrot.lane.b32.xlu1 %v9854_v40, %s9149_s0 }
 0x390   :  { %4907 = vrot.lane.b32.xlu0 %v9869_v47, %s9149_s0  ;;  %4909 = vrot.lane.b32.xlu1 %v9872_v49, %s9149_s0 }
 0x394   :  { %5143 = vrot.lane.b32.xlu0 %v9857_v13, %s9150_s27  ;;  %4905 = vrot.lane.b32.xlu1 %v9879_v50, %s9149_s0 }
 0x398   :  { %5145 = vrot.lane.b32.xlu0 %v9864_v43, %s9150_s27  ;;  %5141 = vrot.lane.b32.xlu1 %v9854_v40, %s9150_s27 }
 0x39c   :  { %5149 = vrot.lane.b32.xlu0 %v9869_v47, %s9150_s27  ;;  %5151 = vrot.lane.b32.xlu1 %v9872_v49, %s9150_s27 }
 0x3a0   :  { %5611 = vrot.lane.b32.xlu0 %v9864_v43, %s9151_s28  ;;  %5147 = vrot.lane.b32.xlu1 %v9879_v50, %s9150_s27 }
 0x3a4   :  { %5613 = vrot.lane.b32.xlu0 %v9879_v50, %s9151_s28  ;;  %5609 = vrot.lane.b32.xlu1 %v9857_v13, %s9151_s28 }
 0x3a8   :  { %5617 = vrot.lane.b32.xlu0 %v9872_v49, %s9151_s28  ;;  %5607 = vrot.lane.b32.xlu1 %v9854_v40, %s9151_s28 }
 0x3ac   :  { %5853 = vrot.lane.b32.xlu0 %v9864_v43, %s9152_s29  ;;  %5615 = vrot.lane.b32.xlu1 %v9869_v47, %s9151_s28 }
 0x3b0   :  { %5855 = vrot.lane.b32.xlu0 %v9879_v50, %s9152_s29  ;;  %5851 = vrot.lane.b32.xlu1 %v9857_v13, %s9152_s29 }
 0x3b4   :  { %5859 = vrot.lane.b32.xlu0 %v9872_v49, %s9152_s29  ;;  %5849 = vrot.lane.b32.xlu1 %v9854_v40, %s9152_s29 }
 0x3b8   :  { %6095 = vrot.lane.b32.xlu0 %v9864_v43, %s9153_s30  ;;  %5857 = vrot.lane.b32.xlu1 %v9869_v47, %s9152_s29 }
 0x3bc   :  { %6097 = vrot.lane.b32.xlu0 %v9879_v50, %s9153_s30  ;;  %6093 = vrot.lane.b32.xlu1 %v9857_v13, %s9153_s30 }
 0x3c0   :  { %6101 = vrot.lane.b32.xlu0 %v9872_v49, %s9153_s30  ;;  %6091 = vrot.lane.b32.xlu1 %v9854_v40, %s9153_s30 }
 0x3c4   :  { %6337 = vrot.lane.b32.xlu0 %v9864_v43, %s9154_s11  ;;  %6099 = vrot.lane.b32.xlu1 %v9869_v47, %s9153_s30 }
 0x3c8   :  { %6339 = vrot.lane.b32.xlu0 %v9879_v50, %s9154_s11  ;;  %6335 = vrot.lane.b32.xlu1 %v9857_v13, %s9154_s11 }
 0x3cc   :  { %6343 = vrot.lane.b32.xlu0 %v9872_v49, %s9154_s11  ;;  %6333 = vrot.lane.b32.xlu1 %v9854_v40, %s9154_s11 }
 0x3d0   :  { %6341 = vrot.lane.b32.xlu1 %v9869_v47, %s9154_s11 }
 0x3d4   :  { %6577 = vperm.xlu1 %9121, %v4427_v51  }
 0x3e1   :  { %v4448_v52 = vpop.permute.xlu1 %4447 }
 0x3e2   :  { %v4450_v53 = vpop.permute.xlu0 %4449 }
 0x3e3   :  { %v4463_v54 = vsel %vm109_vm0, %v4448_v52, %v4450_v53 }
 0x3e4   :  { %4470 = vmatprep.subr.mxu0 %v4463_v54 }
 0x3e6   :  { %v4452_v55 = vpop.permute.xlu0 %4451 }
 0x3e7   :  { %v4462_v7 = vsel %vm109_vm0, %v4450_v53, %v4452_v55 }
 0x3ea   :  { %v4456_v56 = vpop.permute.xlu0 %4455  ;;  %v4458_v57 = vpop.permute.xlu1 %4457 }
 0x3eb   :  { %v4464_v59 = vsel %vm109_vm0, %v4458_v57, %v4448_v52  ;;  %v4459_v8 = vsel %vm109_vm0, %v4456_v56, %v4458_v57 }
 0x3ec   :  { %4471 = vmatpush1.msra.mxu0 %v4464_v59  ;;  %v8862_v59 = vld [vmem:[%s10469_s6 + $0x20] sm:$0xff] }
 0x3ed   :  { %8848 = vmatmul.mubr.msk.f32.vlgmr.msra.gmra.mrb[6].mxu0 %vm118_vm1, %v8847_v58 }
 0x3ee   :  { %v4431_v61 = vpop.permute.xlu0 %4430  ;;  %v4454_v62 = vpop.permute.xlu1 %4453  ;;  %4605 = vmatprep.mubr.f32.mxu0 %v9147_v4 }
 0x3ef   :  { %v4461_v63 = vsel %vm109_vm0, %v4452_v55, %v4454_v62  ;;  %v4460_v11 = vsel %vm109_vm0, %v4454_v62, %v4456_v56 }
 0x3f0   :  { %4541 = vmatprep.subr.mxu0 %v4461_v63 }
 0x3f1   :  { %4542 = vmatpush1.msra.mxu0 %v4462_v7 }
 0x3f2   :  { %v4433_v12 = vpop.permute.xlu0 %4432  ;;  %8849 = vmatmul.mubr.msk.f32.vlgmr.msra.gmra.mrb[8].mxu0 %vm118_vm1, %v8847_v58  ;;  %4612 = vmatprep.subr.mxu0 %v4459_v8  ;;  %v4429_v3 = vpop.permute.xlu1 %4428 }
 0x3f3   :  { %4613 = vmatpush1.msra.mxu0 %v4460_v11  ;;  %v4444_v1 = vsel %vm89_vm2, %v4429_v3, %v4431_v61  ;;  %4676 = vmatprep.mubr.f32.mxu0 %v9147_v4  ;;  %v4443_v19 = vsel %vm89_vm2, %v4431_v61, %v4433_v12 }
 0x3f4   :  { %4686 = vmatprep.subr.mxu0 %v4444_v1 }
 0x3f6   :  { %v4437_v14 = vpop.permute.xlu0 %4436  ;;  %8850 = vmatmul.mubr.msk.f32.vlgmr.msra.gmra.mrb[10].mxu0 %vm118_vm1, %v8847_v58  ;;  %v4439_v15 = vpop.permute.xlu1 %4438 }
 0x3f7   :  { %v4445_v0 = vsel %vm89_vm2, %v4439_v15, %v4429_v3  ;;  %4750 = vmatprep.mubr.f32.mxu0 %v9147_v4  ;;  %v4440_v20 = vsel %vm89_vm2, %v4437_v14, %v4439_v15 }
 0x3f8   :  { %4687 = vmatpush1.msra.mxu0 %v4445_v0 }
 0x3fa   :  { %v4902_v5 = vpop.permute.xlu0 %4901  ;;  %8851 = vmatmul.mubr.msk.f32.vlgmr.msra.gmra.mrb[6].mxu0 %vm118_vm1, %v4446_v16  ;;  %v4435_v17 = vpop.permute.xlu1 %4434 }
 0x3fb   :  { %v4442_v18 = vsel %vm89_vm2, %v4433_v12, %v4435_v17  ;;  %4821 = vmatprep.mubr.f32.mxu0 %v9147_v4  ;;  %v4441_v22 = vsel %vm89_vm2, %v4435_v17, %v4437_v14  ;;  %v8870_v17 = vld [vmem:[%s10469_s6 + $0x30] sm:$0xff] }
 0x3fc   :  { %4757 = vmatprep.subr.mxu0 %v4442_v18 }
 0x3fd   :  { %4758 = vmatpush1.msra.mxu0 %v4443_v19 }
 0x3fe   :  { %v4904_v23 = vpop.permute.xlu0 %4903  ;;  %8852 = vmatmul.mubr.msk.f32.vlgmr.msra.gmra.mrb[8].mxu0 %vm118_vm1, %v4446_v16  ;;  %4828 = vmatprep.subr.mxu0 %v4440_v20  ;;  %v4900_v26 = vpop.permute.xlu1 %4899 }
 0x3ff   :  { %4829 = vmatpush1.msra.mxu0 %v4441_v22  ;;  %v4915_v28 = vsel %vm563_vm3, %v4900_v26, %v4902_v5  ;;  %4892 = vmatprep.mubr.f32.mxu0 %v9147_v4  ;;  %v4914_v39 = vsel %vm563_vm3, %v4902_v5, %v4904_v23 }
 0x400   :  { %4922 = vmatprep.subr.mxu0 %v4915_v28 }
 0x402   :  { %v4908_v32 = vpop.permute.xlu0 %4907  ;;  %8853 = vmatmul.mubr.msk.f32.vlgmr.msra.gmra.mrb[10].mxu0 %vm118_vm1, %v4446_v16  ;;  %v4910_v33 = vpop.permute.xlu1 %4909 }
 0x403   :  { %v4916_v34 = vsel %vm563_vm3, %v4910_v33, %v4900_v26  ;;  %4986 = vmatprep.mubr.f32.mxu0 %v9147_v4  ;;  %v4911_v41 = vsel %vm563_vm3, %v4908_v32, %v4910_v33 }
 0x404   :  { %4923 = vmatpush1.msra.mxu0 %v4916_v34 }
 0x406   :  { %v5144_v36 = vpop.permute.xlu0 %5143  ;;  %8855 = vmatmul.mubr.msk.f32.vlgmr.msra.gmra.mrb[6].mxu0 %vm118_vm1, %v8854_v35  ;;  %v4906_v37 = vpop.permute.xlu1 %4905 }
 0x407   :  { %v4913_v38 = vsel %vm563_vm3, %v4904_v23, %v4906_v37  ;;  %5057 = vmatprep.mubr.f32.mxu0 %v9147_v4  ;;  %v4912_v2 = vsel %vm563_vm3, %v4906_v37, %v4908_v32 }
 0x408   :  { %4993 = vmatprep.subr.mxu0 %v4913_v38 }
 0x409   :  { %4994 = vmatpush1.msra.mxu0 %v4914_v39 }
 0x40a   :  { %v5146_v42 = vpop.permute.xlu0 %5145  ;;  %8856 = vmatmul.mubr.msk.f32.vlgmr.msra.gmra.mrb[8].mxu0 %vm118_vm1, %v8854_v35  ;;  %5064 = vmatprep.subr.mxu0 %v4911_v41  ;;  %v5142_v31 = vpop.permute.xlu1 %5141 }
 0x40b   :  { %5065 = vmatpush1.msra.mxu0 %v4912_v2  ;;  %v5157_v24 = vsel %vm806_vm4, %v5142_v31, %v5144_v36  ;;  %5128 = vmatprep.mubr.f32.mxu0 %v9147_v4  ;;  %v5156_v52 = vsel %vm806_vm4, %v5144_v36, %v5146_v42 }
 0x40c   :  { %5164 = vmatprep.subr.mxu0 %v5157_v24 }
 0x40e   :  { %v5150_v29 = vpop.permute.xlu0 %5149  ;;  %8857 = vmatmul.mubr.msk.f32.vlgmr.msra.gmra.mrb[10].mxu0 %vm118_vm1, %v8854_v35  ;;  %v5152_v30 = vpop.permute.xlu1 %5151  ;;  %v8874_v35 = vld [vmem:[%s10469_s6 + $0x38] sm:$0xff] }
 0x40f   :  { %v5158_v44 = vsel %vm806_vm4, %v5152_v30, %v5142_v31  ;;  %5228 = vmatprep.mubr.f32.mxu0 %v9147_v4  ;;  %v5153_v53 = vsel %vm806_vm4, %v5150_v29, %v5152_v30  ;;  %v8878_v30 = vld [vmem:[%s10469_s6 + $0x40] sm:$0xff] }
 0x410   :  { %5165 = vmatpush1.msra.mxu0 %v5158_v44 }
 0x412   :  { %v5612_v46 = vpop.permute.xlu0 %5611  ;;  %8859 = vmatmul.mubr.msk.f32.vlgmr.msra.gmra.mrb[6].mxu0 %vm118_vm1, %v8858_v45  ;;  %v5148_v48 = vpop.permute.xlu1 %5147 }
 0x413   :  { %v5155_v51 = vsel %vm806_vm4, %v5146_v42, %v5148_v48  ;;  %5299 = vmatprep.mubr.f32.mxu0 %v9147_v4  ;;  %v5154_v54 = vsel %vm806_vm4, %v5148_v48, %v5150_v29 }
 0x414   :  { %5235 = vmatprep.subr.mxu0 %v5155_v51 }
 0x415   :  { %5236 = vmatpush1.msra.mxu0 %v5156_v52 }
 0x416   :  { %v5614_v55 = vpop.permute.xlu0 %5613  ;;  %8860 = vmatmul.mubr.msk.f32.vlgmr.msra.gmra.mrb[8].mxu0 %vm118_vm1, %v8858_v45  ;;  %5306 = vmatprep.subr.mxu0 %v5153_v53  ;;  %v5610_v56 = vpop.permute.xlu1 %5609 }
 0x417   :  { %5307 = vmatpush1.msra.mxu0 %v5154_v54  ;;  %5370 = vmatprep.mubr.f32.mxu0 %v9147_v4  ;;  %v5622_v63 = vsel %vm1273_vm5, %v5610_v56, %v5612_v46  ;;  %v5621_v8 = vsel %vm1273_vm5, %v5612_v46, %v5614_v55 }
 0x418   :  { %5388 = vmatprep.subr.mxu0 %v9857_v13 }
 0x41a   :  { %v5618_v57 = vpop.permute.xlu0 %5617  ;;  %8861 = vmatmul.mubr.msk.f32.vlgmr.msra.gmra.mrb[10].mxu0 %vm118_vm1, %v8858_v45  ;;  %v5608_v58 = vpop.permute.xlu1 %5607 }
 0x41b   :  { %5389 = vmatpush1.msra.mxu0 %v9854_v40  ;;  %5452 = vmatprep.mubr.f32.mxu0 %v9147_v4  ;;  %v5624_v12 = vsel %vm1273_vm5, %v5618_v57, %v5608_v58 }
 0x41c   :  { %5459 = vmatprep.subr.mxu0 %v9879_v50  ;;  %v5623_v50 = vsel %vm1273_vm5, %v5608_v58, %v5610_v56 }
 0x41e   :  { %v5854_v61 = vpop.permute.xlu0 %5853  ;;  %8863 = vmatmul.mubr.msk.f32.vlgmr.msra.gmra.mrb[6].mxu0 %vm118_vm1, %v8862_v59  ;;  %v5616_v62 = vpop.permute.xlu1 %5615 }
 0x41f   :  { %5460 = vmatpush1.msra.mxu0 %v9864_v43  ;;  %5523 = vmatprep.mubr.f32.mxu0 %v9147_v4  ;;  %v5619_v3 = vsel %vm1273_vm5, %v5616_v62, %v5618_v57 }
 0x420   :  { %5530 = vmatprep.subr.mxu0 %v9872_v49  ;;  %v5620_v49 = vsel %vm1273_vm5, %v5614_v55, %v5616_v62 }
 0x422   :  { %v5856_v13 = vpop.permute.xlu0 %5855  ;;  %8864 = vmatmul.mubr.msk.f32.vlgmr.msra.gmra.mrb[8].mxu0 %vm118_vm1, %v8862_v59  ;;  %v5852_v40 = vpop.permute.xlu1 %5851 }
 0x423   :  { %5531 = vmatpush1.msra.mxu0 %v9869_v47  ;;  %5594 = vmatprep.mubr.f32.mxu0 %v9147_v4  ;;  %v8866_v47 = vld [vmem:[%s10469_s6 + $0x28] sm:$0xff]  ;;  %v5864_v15 = vsel %vm1516_vm6, %v5852_v40, %v5854_v61  ;;  %v5863_v19 = vsel %vm1516_vm6, %v5854_v61, %v5856_v13 }
 0x424   :  { %5630 = vmatprep.subr.mxu0 %v5622_v63 }
 0x426   :  { %8865 = vmatmul.mubr.msk.f32.vlgmr.msra.gmra.mrb[10].mxu0 %vm118_vm1, %v8862_v59  ;;  %v5850_v43 = vpop.permute.xlu1 %5849  ;;  %v5860_v7 = vpop.permute.xlu0 %5859 }
 0x427   :  { %5631 = vmatpush1.msra.mxu0 %v5623_v50  ;;  %5694 = vmatprep.mubr.f32.mxu0 %v9147_v4  ;;  %v5865_v0 = vsel %vm1516_vm6, %v5850_v43, %v5852_v40  ;;  %v5866_v22 = vsel %vm1516_vm6, %v5860_v7, %v5850_v43 }
 0x428   :  { %5701 = vmatprep.subr.mxu0 %v5620_v49 }
 0x42a   :  { %8867 = vmatmul.mubr.msk.f32.vlgmr.msra.gmra.mrb[6].mxu0 %vm118_vm1, %v8866_v47  ;;  %v5858_v11 = vpop.permute.xlu1 %5857  ;;  %v6096_v1 = vpop.permute.xlu0 %6095 }
 0x42b   :  { %5702 = vmatpush1.msra.mxu0 %v5621_v8  ;;  %5765 = vmatprep.mubr.f32.mxu0 %v9147_v4  ;;  %v5862_v5 = vsel %vm1516_vm6, %v5856_v13, %v5858_v11  ;;  %v5861_v23 = vsel %vm1516_vm6, %v5858_v11, %v5860_v7 }
 0x42c   :  { %5772 = vmatprep.subr.mxu0 %v5624_v12 }
 0x42e   :  { %8868 = vmatmul.mubr.msk.f32.vlgmr.msra.gmra.mrb[8].mxu0 %vm118_vm1, %v8866_v47  ;;  %v6094_v14 = vpop.permute.xlu1 %6093  ;;  %v6098_v18 = vpop.permute.xlu0 %6097 }
 0x42f   :  { %5773 = vmatpush1.msra.mxu0 %v5619_v3  ;;  %5836 = vmatprep.mubr.f32.mxu0 %v9147_v4  ;;  %v6106_v28 = vsel %vm1759_vm7, %v6094_v14, %v6096_v1  ;;  %v6105_v37 = vsel %vm1759_vm7, %v6096_v1, %v6098_v18 }
 0x430   :  { %5872 = vmatprep.subr.mxu0 %v5864_v15 }
 0x432   :  { %8869 = vmatmul.mubr.msk.f32.vlgmr.msra.gmra.mrb[10].mxu0 %vm118_vm1, %v8866_v47  ;;  %v6092_v16 = vpop.permute.xlu1 %6091  ;;  %v6102_v26 = vpop.permute.xlu0 %6101 }
 0x433   :  { %5873 = vmatpush1.msra.mxu0 %v5865_v0  ;;  %5936 = vmatprep.mubr.f32.mxu0 %v9147_v4  ;;  %v6107_v33 = vsel %vm1759_vm7, %v6092_v16, %v6094_v14  ;;  %v6108_v39 = vsel %vm1759_vm7, %v6102_v26, %v6092_v16  ;;  %v8882_v0 = vld [vmem:[%s10471_s8 + $0x8] sm:$0xff] }
 0x434   :  { %5943 = vmatprep.subr.mxu0 %v5862_v5 }
 0x436   :  { %8871 = vmatmul.mubr.msk.f32.vlgmr.msra.gmra.mrb[6].mxu0 %vm118_vm1, %v8870_v17  ;;  %v6100_v20 = vpop.permute.xlu1 %6099  ;;  %v6338_v36 = vpop.permute.xlu0 %6337 }
 0x437   :  { %5944 = vmatpush1.msra.mxu0 %v5863_v19  ;;  %6007 = vmatprep.mubr.f32.mxu0 %v9147_v4  ;;  %v6104_v34 = vsel %vm1759_vm7, %v6098_v18, %v6100_v20  ;;  %v6103_v41 = vsel %vm1759_vm7, %v6100_v20, %v6102_v26 }
 0x438   :  { %6014 = vmatprep.subr.mxu0 %v5866_v22 }
 0x43a   :  { %8872 = vmatmul.mubr.msk.f32.vlgmr.msra.gmra.mrb[8].mxu0 %vm118_vm1, %v8870_v17  ;;  %v6336_v32 = vpop.permute.xlu1 %6335  ;;  %v6340_v2 = vpop.permute.xlu0 %6339 }
 0x43b   :  { %6015 = vmatpush1.msra.mxu0 %v5861_v23  ;;  %6078 = vmatprep.mubr.f32.mxu0 %v9147_v4  ;;  %v6348_v42 = vsel %vm2002_vm8, %v6336_v32, %v6338_v36  ;;  %v6347_v45 = vsel %vm2002_vm8, %v6338_v36, %v6340_v2 }
 0x43c   :  { %6114 = vmatprep.subr.mxu0 %v6106_v28 }
 0x43e   :  { %8873 = vmatmul.mubr.msk.f32.vlgmr.msra.gmra.mrb[10].mxu0 %vm118_vm1, %v8870_v17  ;;  %v6334_v38 = vpop.permute.xlu1 %6333  ;;  %v6344_v44 = vpop.permute.xlu0 %6343 }
 0x43f   :  { %6115 = vmatpush1.msra.mxu0 %v6107_v33  ;;  %6178 = vmatprep.mubr.f32.mxu0 %v9147_v4  ;;  %v6349_v24 = vsel %vm2002_vm8, %v6334_v38, %v6336_v32  ;;  %v6350_v46 = vsel %vm2002_vm8, %v6344_v44, %v6334_v38 }
 0x440   :  { %6185 = vmatprep.subr.mxu0 %v6104_v34 }
 0x442   :  { %8875 = vmatmul.mubr.msk.f32.vlgmr.msra.gmra.mrb[6].mxu0 %vm118_vm1, %v8874_v35  ;;  %v6342_v31 = vpop.permute.xlu1 %6341 }
 0x443   :  { %6186 = vmatpush1.msra.mxu0 %v6105_v37  ;;  %6249 = vmatprep.mubr.f32.mxu0 %v9147_v4  ;;  %v6346_v29 = vsel %vm2002_vm8, %v6340_v2, %v6342_v31  ;;  %v6345_v48 = vsel %vm2002_vm8, %v6342_v31, %v6344_v44 }
 0x444   :  { %6256 = vmatprep.subr.mxu0 %v6108_v39 }
 0x446   :  { %8876 = vmatmul.mubr.msk.f32.vlgmr.msra.gmra.mrb[8].mxu0 %vm118_vm1, %v8874_v35 }
 0x447   :  { %6257 = vmatpush1.msra.mxu0 %v6103_v41  ;;  %6320 = vmatprep.mubr.f32.mxu0 %v9147_v4 }
 0x448   :  { %6356 = vmatprep.subr.mxu0 %v6348_v42 }
 0x44a   :  { %8877 = vmatmul.mubr.msk.f32.vlgmr.msra.gmra.mrb[10].mxu0 %vm118_vm1, %v8874_v35  ;;  %v6617_v35 = vld [vmem:[%s10471_s8] sm:$0xff] }
 0x44b   :  { %6357 = vmatpush1.msra.mxu0 %v6349_v24  ;;  %6420 = vmatprep.mubr.f32.mxu0 %v9147_v4 }
 0x44c   :  { %6427 = vmatprep.subr.mxu0 %v6346_v29 }
 0x44e   :  { %8879 = vmatmul.mubr.msk.f32.vlgmr.msra.gmra.mrb[6].mxu0 %vm118_vm1, %v8878_v30 }
 0x44f   :  { %6428 = vmatpush1.msra.mxu0 %v6347_v45  ;;  %6491 = vmatprep.mubr.f32.mxu0 %v9147_v4  ;;  %v8889_v45 = vld [vmem:[%s10471_s8 + $0x10] sm:$0xff] }
 0x450   :  { %6498 = vmatprep.subr.mxu0 %v6350_v46 }
 0x452   :  { %8880 = vmatmul.mubr.msk.f32.vlgmr.msra.gmra.mrb[8].mxu0 %vm118_vm1, %v8878_v30 }
 0x453   :  { %6499 = vmatpush1.msra.mxu0 %v6345_v48  ;;  %6562 = vmatprep.mubr.f32.mxu0 %v9147_v4  ;;  %v6578_v51 = vpop.permute.xlu1 %6577 }
 0x456   :  { %8881 = vmatmul.mubr.msk.f32.vlgmr.msra.gmra.mrb[10].mxu0 %vm118_vm1, %v8878_v30 }
 0x521   :  { %v6422_v52 = vpop.f32.mrb[6].mxu0 }
 0x522   :  { %v6580_v53 = vadd.f32 %v6578_v51, %v6422_v52  ;;  %v6424_v54 = vpop.f32.mrb[7].mxu0 }
 0x523   :  { %v6581_v55 = vadd.f32 %v6578_v51, %v6424_v54 }
 0x524   :  { %v6586_v56 = vmax.f32 %v6580_v53, 0.0 }
 0x525   :  { %v6587_v57 = vmax.f32 %v6581_v55, 0.0  ;;  %v6493_v58 = vpop.f32.mrb[8].mxu0 }
 0x526   :  { %v10153_v59 = vmul.f32 %v6586_v56, %v9541_v60  ;;  %v6582_v61 = vadd.f32 %v6578_v51, %v6493_v58  ;;  %v6495_v62 = vpop.f32.mrb[9].mxu0 }
 0x527   :  { %v10156_v13 = vmul.f32 %v6587_v57, %v9546_v9  ;;  %v6583_v60 = vadd.f32 %v6578_v51, %v6495_v62 }
 0x528   :  { %v6588_v40 = vmax.f32 %v6582_v61, 0.0  ;;  %6618 = vrot.lane.b32.xlu0 %v10153_v59, %s9146_s17 }
 0x529   :  { %v6564_v63 = vpop.f32.mrb[10].mxu0  ;;  %6620 = vrot.lane.b32.xlu1 %v10156_v13, %s9146_s17  ;;  %v6589_v11 = vmax.f32 %v6583_v60, 0.0 }
 0x52a   :  { %v10163_v50 = vmul.f32 %v6588_v40, %v9550_v6  ;;  %v6584_v43 = vadd.f32 %v6578_v51, %v6564_v63  ;;  %v6566_v49 = vpop.f32.mrb[11].mxu0  ;;  %v8893_v40 = vld [vmem:[%s10471_s8 + $0x18] sm:$0xff] }
 0x52b   :  { %v6585_v47 = vadd.f32 %v6578_v51, %v6566_v49  ;;  %v10178_v6 = vmul.f32 %v6589_v11, %v9564_v27 }
 0x52c   :  { %v6590_v7 = vmax.f32 %v6584_v43, 0.0 }
 0x52d   :  { %v6591_v8 = vmax.f32 %v6585_v47, 0.0  ;;  %6622 = vrot.lane.b32.xlu1 %v10163_v50, %s9146_s17 }
 0x52e   :  { %v10168_v9 = vmul.f32 %v6590_v7, %v9562_v25 }
 0x52f   :  { %v10171_v12 = vmul.f32 %v6591_v8, %v9555_v21  ;;  %v6598_v21 = vld [vmem:[%s10472_s9] sm:$0xff] }
 0x531   :  { %6626 = vrot.lane.b32.xlu1 %v10168_v9, %s9146_s17  ;;  %6628 = vrot.lane.b32.xlu0 %v10171_v12, %s9146_s17 }
 0x535   :  { %6601 = vrot.lane.b32.xlu1 %v10156_v13, %s9148_s26  ;;  %6624 = vrot.lane.b32.xlu0 %v10178_v6, %s9146_s17 }
 0x539   :  { %6603 = vrot.lane.b32.xlu1 %v10163_v50, %s9148_s26  ;;  %6599 = vrot.lane.b32.xlu0 %v10153_v59, %s9148_s26 }
 0x53d   :  { %6607 = vrot.lane.b32.xlu1 %v10168_v9, %s9148_s26  ;;  %6609 = vrot.lane.b32.xlu0 %v10171_v12, %s9148_s26 }
 0x541   :  { %7072 = vrot.lane.b32.xlu1 %v10156_v13, %s9149_s0  ;;  %6605 = vrot.lane.b32.xlu0 %v10178_v6, %s9148_s26 }
 0x545   :  { %7074 = vrot.lane.b32.xlu1 %v10163_v50, %s9149_s0  ;;  %7070 = vrot.lane.b32.xlu0 %v10153_v59, %s9149_s0 }
 0x549   :  { %7078 = vrot.lane.b32.xlu1 %v10168_v9, %s9149_s0  ;;  %7080 = vrot.lane.b32.xlu0 %v10171_v12, %s9149_s0 }
 0x54d   :  { %7314 = vrot.lane.b32.xlu1 %v10156_v13, %s9150_s27  ;;  %7076 = vrot.lane.b32.xlu0 %v10178_v6, %s9149_s0 }
 0x551   :  { %7316 = vrot.lane.b32.xlu1 %v10163_v50, %s9150_s27  ;;  %7312 = vrot.lane.b32.xlu0 %v10153_v59, %s9150_s27 }
 0x555   :  { %7320 = vrot.lane.b32.xlu1 %v10168_v9, %s9150_s27  ;;  %7322 = vrot.lane.b32.xlu0 %v10171_v12, %s9150_s27 }
 0x559   :  { %7782 = vrot.lane.b32.xlu1 %v10163_v50, %s9151_s28  ;;  %7318 = vrot.lane.b32.xlu0 %v10178_v6, %s9150_s27 }
 0x55d   :  { %7784 = vrot.lane.b32.xlu1 %v10178_v6, %s9151_s28  ;;  %7780 = vrot.lane.b32.xlu0 %v10156_v13, %s9151_s28 }
 0x561   :  { %7788 = vrot.lane.b32.xlu1 %v10171_v12, %s9151_s28  ;;  %7778 = vrot.lane.b32.xlu0 %v10153_v59, %s9151_s28 }
 0x565   :  { %8024 = vrot.lane.b32.xlu1 %v10163_v50, %s9152_s29  ;;  %7786 = vrot.lane.b32.xlu0 %v10168_v9, %s9151_s28 }
 0x569   :  { %8026 = vrot.lane.b32.xlu1 %v10178_v6, %s9152_s29  ;;  %8022 = vrot.lane.b32.xlu0 %v10156_v13, %s9152_s29 }
 0x56d   :  { %8030 = vrot.lane.b32.xlu1 %v10171_v12, %s9152_s29  ;;  %8020 = vrot.lane.b32.xlu0 %v10153_v59, %s9152_s29 }
 0x571   :  { %8266 = vrot.lane.b32.xlu1 %v10163_v50, %s9153_s30  ;;  %8028 = vrot.lane.b32.xlu0 %v10168_v9, %s9152_s29 }
 0x575   :  { %8268 = vrot.lane.b32.xlu1 %v10178_v6, %s9153_s30  ;;  %8264 = vrot.lane.b32.xlu0 %v10156_v13, %s9153_s30 }
 0x579   :  { %8272 = vrot.lane.b32.xlu1 %v10171_v12, %s9153_s30  ;;  %8262 = vrot.lane.b32.xlu0 %v10153_v59, %s9153_s30 }
 0x57d   :  { %8508 = vrot.lane.b32.xlu1 %v10163_v50, %s9154_s11  ;;  %8270 = vrot.lane.b32.xlu0 %v10168_v9, %s9153_s30 }
 0x581   :  { %8510 = vrot.lane.b32.xlu1 %v10178_v6, %s9154_s11  ;;  %8506 = vrot.lane.b32.xlu0 %v10156_v13, %s9154_s11 }
 0x585   :  { %8514 = vrot.lane.b32.xlu1 %v10171_v12, %s9154_s11  ;;  %8504 = vrot.lane.b32.xlu0 %v10153_v59, %s9154_s11 }
 0x589   :  { %8512 = vrot.lane.b32.xlu0 %v10168_v9, %s9154_s11 }
 0x58d   :  { %8748 = vperm.xlu0 %9120, %v6598_v21  }
 0x59a   :  { %v6619_v25 = vpop.permute.xlu0 %6618 }
 0x59b   :  { %v6621_v27 = vpop.permute.xlu1 %6620 }
 0x59c   :  { %v6634_v3 = vsel %vm109_vm0, %v6619_v25, %v6621_v27 }
 0x59d   :  { %6641 = vmatprep.subr.mxu1 %v6634_v3 }
 0x59f   :  { %v6623_v1 = vpop.permute.xlu1 %6622 }
 0x5a0   :  { %v6633_v19 = vsel %vm109_vm0, %v6621_v27, %v6623_v1  ;;  %v8897_v27 = vld [vmem:[%s10471_s8 + $0x20] sm:$0xff] }
 0x5a3   :  { %v6627_v14 = vpop.permute.xlu1 %6626  ;;  %v6629_v15 = vpop.permute.xlu0 %6628 }
 0x5a4   :  { %v6635_v16 = vsel %vm109_vm0, %v6629_v15, %v6619_v25  ;;  %v6630_v20 = vsel %vm109_vm0, %v6627_v14, %v6629_v15 }
 0x5a5   :  { %6642 = vmatpush1.msra.mxu1 %v6635_v16 }
 0x5a6   :  { %8883 = vmatmul.mubr.msk.f32.vlgmr.msra.gmra.mrb[6].mxu1 %vm118_vm1, %v8882_v0 }
 0x5a7   :  { %v6602_v5 = vpop.permute.xlu1 %6601  ;;  %v6625_v17 = vpop.permute.xlu0 %6624  ;;  %6776 = vmatprep.mubr.f32.mxu1 %v9147_v4 }
 0x5a8   :  { %v6632_v18 = vsel %vm109_vm0, %v6623_v1, %v6625_v17  ;;  %v6631_v22 = vsel %vm109_vm0, %v6625_v17, %v6627_v14 }
 0x5a9   :  { %6712 = vmatprep.subr.mxu1 %v6632_v18 }
 0x5aa   :  { %6713 = vmatpush1.msra.mxu1 %v6633_v19 }
 0x5ab   :  { %v6604_v23 = vpop.permute.xlu1 %6603  ;;  %8884 = vmatmul.mubr.msk.f32.vlgmr.msra.gmra.mrb[8].mxu1 %vm118_vm1, %v8882_v0  ;;  %6783 = vmatprep.subr.mxu1 %v6630_v20  ;;  %v6600_v26 = vpop.permute.xlu0 %6599 }
 0x5ac   :  { %6784 = vmatpush1.msra.mxu1 %v6631_v22  ;;  %v6615_v28 = vsel %vm89_vm2, %v6600_v26, %v6602_v5  ;;  %6847 = vmatprep.mubr.f32.mxu1 %v9147_v4  ;;  %v6614_v39 = vsel %vm89_vm2, %v6602_v5, %v6604_v23 }
 0x5ad   :  { %6857 = vmatprep.subr.mxu1 %v6615_v28  ;;  %v8905_v28 = vld [vmem:[%s10471_s8 + $0x30] sm:$0xff] }
 0x5af   :  { %v6608_v32 = vpop.permute.xlu1 %6607  ;;  %8885 = vmatmul.mubr.msk.f32.vlgmr.msra.gmra.mrb[10].mxu1 %vm118_vm1, %v8882_v0  ;;  %v6610_v33 = vpop.permute.xlu0 %6609 }
 0x5b0   :  { %v6616_v34 = vsel %vm89_vm2, %v6610_v33, %v6600_v26  ;;  %6921 = vmatprep.mubr.f32.mxu1 %v9147_v4  ;;  %v6611_v41 = vsel %vm89_vm2, %v6608_v32, %v6610_v33 }
 0x5b1   :  { %6858 = vmatpush1.msra.mxu1 %v6616_v34 }
 0x5b3   :  { %v7073_v36 = vpop.permute.xlu1 %7072  ;;  %8886 = vmatmul.mubr.msk.f32.vlgmr.msra.gmra.mrb[6].mxu1 %vm118_vm1, %v6617_v35  ;;  %v6606_v37 = vpop.permute.xlu0 %6605 }
 0x5b4   :  { %v6613_v38 = vsel %vm89_vm2, %v6604_v23, %v6606_v37  ;;  %6992 = vmatprep.mubr.f32.mxu1 %v9147_v4  ;;  %v6612_v2 = vsel %vm89_vm2, %v6606_v37, %v6608_v32 }
 0x5b5   :  { %6928 = vmatprep.subr.mxu1 %v6613_v38 }
 0x5b6   :  { %6929 = vmatpush1.msra.mxu1 %v6614_v39 }
 0x5b7   :  { %v7075_v42 = vpop.permute.xlu1 %7074  ;;  %8887 = vmatmul.mubr.msk.f32.vlgmr.msra.gmra.mrb[8].mxu1 %vm118_vm1, %v6617_v35  ;;  %6999 = vmatprep.subr.mxu1 %v6611_v41  ;;  %v7071_v31 = vpop.permute.xlu0 %7070 }
 0x5b8   :  { %7000 = vmatpush1.msra.mxu1 %v6612_v2  ;;  %v7086_v24 = vsel %vm563_vm3, %v7071_v31, %v7073_v36  ;;  %7063 = vmatprep.mubr.f32.mxu1 %v9147_v4  ;;  %v7085_v52 = vsel %vm563_vm3, %v7073_v36, %v7075_v42 }
 0x5b9   :  { %7093 = vmatprep.subr.mxu1 %v7086_v24 }
 0x5bb   :  { %v7079_v29 = vpop.permute.xlu1 %7078  ;;  %8888 = vmatmul.mubr.msk.f32.vlgmr.msra.gmra.mrb[10].mxu1 %vm118_vm1, %v6617_v35  ;;  %v7081_v30 = vpop.permute.xlu0 %7080 }
 0x5bc   :  { %v7087_v44 = vsel %vm563_vm3, %v7081_v30, %v7071_v31  ;;  %7157 = vmatprep.mubr.f32.mxu1 %v9147_v4  ;;  %v7082_v53 = vsel %vm563_vm3, %v7079_v29, %v7081_v30 }
 0x5bd   :  { %7094 = vmatpush1.msra.mxu1 %v7087_v44 }
 0x5bf   :  { %v7315_v46 = vpop.permute.xlu1 %7314  ;;  %8890 = vmatmul.mubr.msk.f32.vlgmr.msra.gmra.mrb[6].mxu1 %vm118_vm1, %v8889_v45  ;;  %v7077_v48 = vpop.permute.xlu0 %7076 }
 0x5c0   :  { %v7084_v51 = vsel %vm563_vm3, %v7075_v42, %v7077_v48  ;;  %7228 = vmatprep.mubr.f32.mxu1 %v9147_v4  ;;  %v7083_v54 = vsel %vm563_vm3, %v7077_v48, %v7079_v29  ;;  %v8909_v42 = vld [vmem:[%s10471_s8 + $0x38] sm:$0xff] }
 0x5c1   :  { %7164 = vmatprep.subr.mxu1 %v7084_v51 }
 0x5c2   :  { %7165 = vmatpush1.msra.mxu1 %v7085_v52 }
 0x5c3   :  { %v7317_v55 = vpop.permute.xlu1 %7316  ;;  %8891 = vmatmul.mubr.msk.f32.vlgmr.msra.gmra.mrb[8].mxu1 %vm118_vm1, %v8889_v45  ;;  %7235 = vmatprep.subr.mxu1 %v7082_v53  ;;  %v7313_v56 = vpop.permute.xlu0 %7312  ;;  %v8913_v53 = vld [vmem:[%s10471_s8 + $0x40] sm:$0xff] }
 0x5c4   :  { %7236 = vmatpush1.msra.mxu1 %v7083_v54  ;;  %v7328_v57 = vsel %vm806_vm4, %v7313_v56, %v7315_v46  ;;  %7299 = vmatprep.mubr.f32.mxu1 %v9147_v4  ;;  %v7327_v60 = vsel %vm806_vm4, %v7315_v46, %v7317_v55 }
 0x5c5   :  { %7335 = vmatprep.subr.mxu1 %v7328_v57 }
 0x5c7   :  { %v7321_v58 = vpop.permute.xlu1 %7320  ;;  %8892 = vmatmul.mubr.msk.f32.vlgmr.msra.gmra.mrb[10].mxu1 %vm118_vm1, %v8889_v45  ;;  %v7323_v61 = vpop.permute.xlu0 %7322 }
 0x5c8   :  { %v7329_v62 = vsel %vm806_vm4, %v7323_v61, %v7313_v56  ;;  %7399 = vmatprep.mubr.f32.mxu1 %v9147_v4  ;;  %v7324_v47 = vsel %vm806_vm4, %v7321_v58, %v7323_v61 }
 0x5c9   :  { %7336 = vmatpush1.msra.mxu1 %v7329_v62 }
 0x5cb   :  { %v7783_v63 = vpop.permute.xlu1 %7782  ;;  %8894 = vmatmul.mubr.msk.f32.vlgmr.msra.gmra.mrb[6].mxu1 %vm118_vm1, %v8893_v40  ;;  %v7319_v43 = vpop.permute.xlu0 %7318 }
 0x5cc   :  { %v7326_v49 = vsel %vm806_vm4, %v7317_v55, %v7319_v43  ;;  %7470 = vmatprep.mubr.f32.mxu1 %v9147_v4  ;;  %v7325_v7 = vsel %vm806_vm4, %v7319_v43, %v7321_v58 }
 0x5cd   :  { %7406 = vmatprep.subr.mxu1 %v7326_v49 }
 0x5ce   :  { %7407 = vmatpush1.msra.mxu1 %v7327_v60 }
 0x5cf   :  { %v7785_v8 = vpop.permute.xlu1 %7784  ;;  %8895 = vmatmul.mubr.msk.f32.vlgmr.msra.gmra.mrb[8].mxu1 %vm118_vm1, %v8893_v40  ;;  %7477 = vmatprep.subr.mxu1 %v7324_v47  ;;  %v7781_v11 = vpop.permute.xlu0 %7780 }
 0x5d0   :  { %7478 = vmatpush1.msra.mxu1 %v7325_v7  ;;  %7541 = vmatprep.mubr.f32.mxu1 %v9147_v4  ;;  %v7793_v14 = vsel %vm1273_vm5, %v7781_v11, %v7783_v63  ;;  %v7792_v0 = vsel %vm1273_vm5, %v7783_v63, %v7785_v8 }
 0x5d1   :  { %7559 = vmatprep.subr.mxu1 %v10156_v13 }
 0x5d3   :  { %v7789_v21 = vpop.permute.xlu1 %7788  ;;  %8896 = vmatmul.mubr.msk.f32.vlgmr.msra.gmra.mrb[10].mxu1 %vm118_vm1, %v8893_v40  ;;  %v7779_v25 = vpop.permute.xlu0 %7778 }
 0x5d4   :  { %7560 = vmatpush1.msra.mxu1 %v10153_v59  ;;  %7623 = vmatprep.mubr.f32.mxu1 %v9147_v4  ;;  %v7795_v5 = vsel %vm1273_vm5, %v7789_v21, %v7779_v25 }
 0x5d5   :  { %7630 = vmatprep.subr.mxu1 %v10178_v6  ;;  %v7794_v6 = vsel %vm1273_vm5, %v7779_v25, %v7781_v11 }
 0x5d7   :  { %v8025_v3 = vpop.permute.xlu1 %8024  ;;  %8898 = vmatmul.mubr.msk.f32.vlgmr.msra.gmra.mrb[6].mxu1 %vm118_vm1, %v8897_v27  ;;  %v7787_v1 = vpop.permute.xlu0 %7786 }
 0x5d8   :  { %7631 = vmatpush1.msra.mxu1 %v10163_v50  ;;  %7694 = vmatprep.mubr.f32.mxu1 %v9147_v4  ;;  %v7790_v17 = vsel %vm1273_vm5, %v7787_v1, %v7789_v21 }
 0x5d9   :  { %7701 = vmatprep.subr.mxu1 %v10171_v12  ;;  %v7791_v12 = vsel %vm1273_vm5, %v7785_v8, %v7787_v1 }
 0x5db   :  { %v8027_v13 = vpop.permute.xlu1 %8026  ;;  %8899 = vmatmul.mubr.msk.f32.vlgmr.msra.gmra.mrb[8].mxu1 %vm118_vm1, %v8897_v27  ;;  %v8023_v59 = vpop.permute.xlu0 %8022 }
 0x5dc   :  { %7702 = vmatpush1.msra.mxu1 %v10168_v9  ;;  %7765 = vmatprep.mubr.f32.mxu1 %v9147_v4  ;;  %v8901_v9 = vld [vmem:[%s10471_s8 + $0x28] sm:$0xff]  ;;  %v8035_v20 = vsel %vm1516_vm6, %v8023_v59, %v8025_v3  ;;  %v8034_v33 = vsel %vm1516_vm6, %v8025_v3, %v8027_v13  ;;  %s9156_s8 = smov [#allocation2]  }
 0x5dd   :  { %7801 = vmatprep.subr.mxu1 %v7793_v14  ;;  %s8769_s15 = sshll.u32 %s9156_s8, 4  ;;  %s8770_s15 = int_to_ptr.vmem [resolvable:$true] %s8769_s15 }
 0x5de   :  { %s9122_s3 = scalar_lea.vmem %s8770_s15, 768  ;;  %p9127_p1 = scmp.lt.s32.totalorder %s8770_s15, %s8770_s15 }
 0x5df   :  { %8900 = vmatmul.mubr.msk.f32.vlgmr.msra.gmra.mrb[10].mxu1 %vm118_vm1, %v8897_v27  ;;  %v8021_v50 = vpop.permute.xlu0 %8020  ;;  %v8031_v15 = vpop.permute.xlu1 %8030  ;;  %p9123_p0 = scmp.ne.s32.totalorder %s8770_s15, %s9122_s3  ;;  %p9128_p2 = scmp.lt.s32.totalorder %s9122_s3, %s9122_s3 }
 0x5e0   :  { %7802 = vmatpush1.msra.mxu1 %v7794_v6  ;;  %7865 = vmatprep.mubr.f32.mxu1 %v9147_v4  ;;  %v8036_v22 = vsel %vm1516_vm6, %v8021_v50, %v8023_v59  ;;  %v8037_v35 = vsel %vm1516_vm6, %v8031_v15, %v8021_v50 }
 0x5e1   :  { %7872 = vmatprep.subr.mxu1 %v7791_v12  ;;  %p9129_p3 = por %p9128_p2, %p9127_p1 }
 0x5e3   :  { %8902 = vmatmul.mubr.msk.f32.vlgmr.msra.gmra.mrb[6].mxu1 %vm118_vm1, %v8901_v9  ;;  %v8029_v16 = vpop.permute.xlu0 %8028  ;;  %v8267_v18 = vpop.permute.xlu1 %8266  ;;  %p9130_p4 = pnand %p9129_p3, %p9123_p0 }
 0x5e4   :  { %7873 = vmatpush1.msra.mxu1 %v7792_v0  ;;  %7936 = vmatprep.mubr.f32.mxu1 %v9147_v4  ;;  %v8033_v26 = vsel %vm1516_vm6, %v8027_v13, %v8029_v16  ;;  %v8032_v36 = vsel %vm1516_vm6, %v8029_v16, %v8031_v15 }
 0x5e5   :  { %7943 = vmatprep.subr.mxu1 %v7795_v5 }
 0x5e7   :  { %8903 = vmatmul.mubr.msk.f32.vlgmr.msra.gmra.mrb[8].mxu1 %vm118_vm1, %v8901_v9  ;;  %v8265_v19 = vpop.permute.xlu0 %8264  ;;  %v8269_v32 = vpop.permute.xlu1 %8268 }
 0x5e8   :  { %7944 = vmatpush1.msra.mxu1 %v7790_v17  ;;  %8007 = vmatprep.mubr.f32.mxu1 %v9147_v4  ;;  %v8277_v38 = vsel %vm1759_vm7, %v8265_v19, %v8267_v18  ;;  %v8276_v24 = vsel %vm1759_vm7, %v8267_v18, %v8269_v32 }
 0x5e9   :  { %8043 = vmatprep.subr.mxu1 %v8035_v20 }
 0x5eb   :  { %8904 = vmatmul.mubr.msk.f32.vlgmr.msra.gmra.mrb[10].mxu1 %vm118_vm1, %v8901_v9  ;;  %v8263_v23 = vpop.permute.xlu0 %8262  ;;  %v8273_v37 = vpop.permute.xlu1 %8272 }
 0x5ec   :  { %8044 = vmatpush1.msra.mxu1 %v8036_v22  ;;  %8107 = vmatprep.mubr.f32.mxu1 %v9147_v4  ;;  %v8278_v41 = vsel %vm1759_vm7, %v8263_v23, %v8265_v19  ;;  %v8279_v30 = vsel %vm1759_vm7, %v8273_v37, %v8263_v23 }
 0x5ed   :  { %8114 = vmatprep.subr.mxu1 %v8033_v26 }
 0x5ef   :  { %8906 = vmatmul.mubr.msk.f32.vlgmr.msra.gmra.mrb[6].mxu1 %vm118_vm1, %v8905_v28  ;;  %v8271_v34 = vpop.permute.xlu0 %8270  ;;  %v8509_v31 = vpop.permute.xlu1 %8508 }
 0x5f0   :  { %8115 = vmatpush1.msra.mxu1 %v8034_v33  ;;  %8178 = vmatprep.mubr.f32.mxu1 %v9147_v4  ;;  %v8275_v2 = vsel %vm1759_vm7, %v8269_v32, %v8271_v34  ;;  %v8274_v44 = vsel %vm1759_vm7, %v8271_v34, %v8273_v37 }
 0x5f1   :  { %8185 = vmatprep.subr.mxu1 %v8037_v35 }
 0x5f3   :  { %8907 = vmatmul.mubr.msk.f32.vlgmr.msra.gmra.mrb[8].mxu1 %vm118_vm1, %v8905_v28  ;;  %v8507_v39 = vpop.permute.xlu0 %8506  ;;  %v8511_v45 = vpop.permute.xlu1 %8510 }
 0x5f4   :  { %8186 = vmatpush1.msra.mxu1 %v8032_v36  ;;  %8249 = vmatprep.mubr.f32.mxu1 %v9147_v4  ;;  %v8519_v46 = vsel %vm2002_vm8, %v8507_v39, %v8509_v31  ;;  %v8518_v55 = vsel %vm2002_vm8, %v8509_v31, %v8511_v45 }
 0x5f5   :  { %8285 = vmatprep.subr.mxu1 %v8277_v38 }
 0x5f7   :  { %8908 = vmatmul.mubr.msk.f32.vlgmr.msra.gmra.mrb[10].mxu1 %vm118_vm1, %v8905_v28  ;;  %v8505_v29 = vpop.permute.xlu0 %8504  ;;  %v8515_v54 = vpop.permute.xlu1 %8514 }
 0x5f8   :  { %8286 = vmatpush1.msra.mxu1 %v8278_v41  ;;  %8349 = vmatprep.mubr.f32.mxu1 %v9147_v4  ;;  %v8520_v51 = vsel %vm2002_vm8, %v8505_v29, %v8507_v39  ;;  %v8521_v56 = vsel %vm2002_vm8, %v8515_v54, %v8505_v29 }
 0x5f9   :  { %8356 = vmatprep.subr.mxu1 %v8275_v2 }
 0x5fb   :  { %8910 = vmatmul.mubr.msk.f32.vlgmr.msra.gmra.mrb[6].mxu1 %vm118_vm1, %v8909_v42  ;;  %v8513_v48 = vpop.permute.xlu0 %8512 }
 0x5fc   :  { %8357 = vmatpush1.msra.mxu1 %v8276_v24  ;;  %8420 = vmatprep.mubr.f32.mxu1 %v9147_v4  ;;  %v8517_v52 = vsel %vm2002_vm8, %v8511_v45, %v8513_v48  ;;  %v8516_v57 = vsel %vm2002_vm8, %v8513_v48, %v8515_v54 }
 0x5fd   :  { %8427 = vmatprep.subr.mxu1 %v8279_v30 }
 0x5ff   :  { %8911 = vmatmul.mubr.msk.f32.vlgmr.msra.gmra.mrb[8].mxu1 %vm118_vm1, %v8909_v42 }
 0x600   :  { %8428 = vmatpush1.msra.mxu1 %v8274_v44  ;;  %8491 = vmatprep.mubr.f32.mxu1 %v9147_v4 }
 0x601   :  { %8527 = vmatprep.subr.mxu1 %v8519_v46 }
 0x603   :  { %8912 = vmatmul.mubr.msk.f32.vlgmr.msra.gmra.mrb[10].mxu1 %vm118_vm1, %v8909_v42 }
 0x604   :  { %8528 = vmatpush1.msra.mxu1 %v8520_v51  ;;  %8591 = vmatprep.mubr.f32.mxu1 %v9147_v4 }
 0x605   :  { %8598 = vmatprep.subr.mxu1 %v8517_v52 }
 0x607   :  { %8914 = vmatmul.mubr.msk.f32.vlgmr.msra.gmra.mrb[6].mxu1 %vm118_vm1, %v8913_v53 }
 0x608   :  { %8599 = vmatpush1.msra.mxu1 %v8518_v55  ;;  %8662 = vmatprep.mubr.f32.mxu1 %v9147_v4 }
 0x609   :  { %8669 = vmatprep.subr.mxu1 %v8521_v56 }
 0x60b   :  { %8915 = vmatmul.mubr.msk.f32.vlgmr.msra.gmra.mrb[8].mxu1 %vm118_vm1, %v8913_v53 }
 0x60c   :  { %8670 = vmatpush1.msra.mxu1 %v8516_v57  ;;  %8733 = vmatprep.mubr.f32.mxu1 %v9147_v4  ;;  %v8749_v58 = vpop.permute.xlu0 %8748 }
 0x60f   :  { %8916 = vmatmul.mubr.msk.f32.vlgmr.msra.gmra.mrb[10].mxu1 %vm118_vm1, %v8913_v53 }
 0x6da   :  { %v8593_v61 = vpop.f32.mrb[6].mxu1 }
 0x6db   :  { %v8751_v62 = vadd.f32 %v8749_v58, %v8593_v61  ;;  %v8595_v40 = vpop.f32.mrb[7].mxu1 }
 0x6dc   :  { %v8752_v63 = vadd.f32 %v8749_v58, %v8595_v40 }
 0x6dd   :  { %8757 = vst [vmem:[#allocation2] sm:$0xff] %v8751_v62 }
 0x6de   :  { %8758 = vst [vmem:[#allocation2 + $0x8] sm:$0xff] %v8752_v63  ;;  %v8664_v43 = vpop.f32.mrb[8].mxu1 }
 0x6df   :  { %v8753_v49 = vadd.f32 %v8749_v58, %v8664_v43  ;;  %v8666_v60 = vpop.f32.mrb[9].mxu1 }
 0x6e0   :  { %v8754_v47 = vadd.f32 %v8749_v58, %v8666_v60 }
 0x6e1   :  { %8759 = vst [vmem:[#allocation2 + $0x10] sm:$0xff] %v8753_v49 }
 0x6e2   :  { %8760 = vst [vmem:[#allocation2 + $0x18] sm:$0xff] %v8754_v47  ;;  %v8735_v10 = vpop.f32.mrb[10].mxu1 }
 0x6e3   :  { %v8755_v7 = vadd.f32 %v8749_v58, %v8735_v10  ;;  %v8737_v4 = vpop.f32.mrb[11].mxu1 }
 0x6e4   :  { %v8756_v8 = vadd.f32 %v8749_v58, %v8737_v4 }
 0x6e5   :  { %8761 = vst [vmem:[#allocation2 + $0x20] sm:$0xff] %v8755_v7 }
 0x6e6   :  { %8762 = vst [vmem:[#allocation2 + $0x28] sm:$0xff] %v8756_v8 }
 0x6e7   :  { %9133 = shalt.err (!%p9130_p4)
}
 0x6e8   :  { %s9134_s18 = scalar_lea.hbm %s10473_s10, 768 }
 0x6e9   :  { %p9135_p5 = scmp.ne.s32.totalorder %s10473_s10, %s9134_s18  ;;  %p9138_p6 = scmp.lt.u32.totalorder %s9134_s18, %s10473_s10 }
 0x6eb   :  { %p9140_p7 = pnand %p9138_p6, %p9135_p5 }
 0x6ed   :  { %9143 = shalt.err (!%p9140_p7)
}
 0x6ee   :  { %8772 = dma.vmem_to_hbm [thread:$0]  %s8770_s15, 768, %s10473_s10, [#allocation3]  }
 0x6ef   :  { %9144 = dma.done.wait [#allocation3], 768  }
 0x6f0   :  { %9145 = vsyncadd [#allocation3], 4294966528 }
 0x6f1   :  { %8776 = vsyncpa [#allocation3], 1 }

</bundles_post_ra>
